<compile_context>
chip_gen: v7x
topology: tpu7x:2x2x1
jax: 0.10.0
libtpu: 0.0.40
codegen_flags: <defaults>
</compile_context>

<pallas_src>
import functools

import jax
import jax.numpy as jnp
from jax.experimental import pallas as pl
from jax.experimental.pallas import tpu as pltpu

EPS = 1e-5          # PyTorch BatchNorm1d default eps
NEG_SLOPE = 0.01    # nn.LeakyReLU default negative_slope


# ---------------------------------------------------------------------------
# Pallas kernel (transposed dataflow: batch on the lane axis)
# ---------------------------------------------------------------------------
def fullstack_kernel(lys, S, D,
                     ids_ref, tab_ref, shift_ref,
                     w1t_ref, b1t_ref, w2t_ref, b2t_ref, w3t_ref, b3_ref,
                     out_ref):
    # ids_ref   : (2, tb) int32        row 0 = user ids, row 1 = item ids
    # tab_ref   : (2*S*D, 2N) mm_dtype block-diag [xu_table ; xi_table]^T,
    #                                  BN scales pre-folded
    # shift_ref : (2*S*D, 1) f32       per-(slot,feature) BN shifts
    # w1t_ref   : (H, G*D) mm_dtype    folded w1^T (lys_bn + bn1 folded)
    # b1t_ref   : (H, 1) f32           folded b1
    # w2t_ref   : (H, H) mm_dtype      folded w2^T (bn2 folded)
    # b2t_ref   : (H, 1) f32           folded b2
    # w3t_ref   : (8, H) f32           w3^T padded to 8 rows (rows 1..7 zero)
    # b3_ref    : (1,) f32 in SMEM
    # out_ref   : (1, tb) f32          lane-dense output block
    twoN = tab_ref.shape[1]
    N = twoN // 2
    tb = ids_ref.shape[1]
    mm_dtype = w1t_ref.dtype

    # ---- fused embedding gather: one combined one-hot, one MXU dot ---------
    # NOTE: ids outside [0, N) select an all-zero row (documented precondition);
    # the zero-padded batch tail uses id 0 and is sliced off by the wrapper.
    u_id = ids_ref[0:1, :]                                         # (1, tb)
    i_id = ids_ref[1:2, :]                                         # (1, tb)
    row_ids = jax.lax.broadcasted_iota(jnp.int32, (twoN, tb), 0)   # (2N, tb)
    tgt = jnp.where(row_ids < N, u_id, i_id + N)                   # (2N, tb)
    onehot = (row_ids == tgt).astype(mm_dtype)                     # (2N, tb)

    # emb rows = [xu_0 ; xu_1 ; xu_2 ; xi_0 ; xi_1 ; xi_2], each D rows,
    # batch on lanes.  BN scale is inside the table; shift added here.
    emb = jnp.dot(tab_ref[...], onehot,
                  preferred_element_type=jnp.float32) + shift_ref[...]  # (2SD, tb)

    # ---- layer 1: single packed K = G*D matmul against folded w1^T ---------
    prods = [emb[a * D:(a + 1) * D, :] * emb[(S + b) * D:(S + b + 1) * D, :]
             for (a, b) in lys]                                    # 9 x (D, tb)
    slab = jnp.concatenate(prods + [emb], axis=0)                  # (G*D, tb)
    h = jnp.dot(w1t_ref[...], slab.astype(mm_dtype),
                preferred_element_type=jnp.float32) + b1t_ref[...]  # (H, tb)
    h = jnp.where(h >= 0.0, h, NEG_SLOPE * h)
    # TODO(synk): training-mode Dropout (random mask) not implemented; eval identity.

    # ---- layer 2 (bn2 folded into w2/b2) ------------------------------------
    h = jnp.dot(w2t_ref[...], h.astype(mm_dtype),
                preferred_element_type=jnp.float32) + b2t_ref[...]  # (H, tb)
    h = jnp.where(h >= 0.0, h, NEG_SLOPE * h)

    # ---- final Linear(H -> 1): (8, H) @ (H, tb), row 0 is the real result ---
    out8 = jnp.dot(w3t_ref[...], h, preferred_element_type=jnp.float32)  # (8, tb)
    out_ref[...] = out8[0:1, :] + b3_ref[0]


# ---------------------------------------------------------------------------
# One-time host-side parameter folding (hoisted out of the per-call path)
# ---------------------------------------------------------------------------
def prepare_params(X, params, lys, matmul_dtype=jnp.bfloat16):
    """Fold every eval-mode BN affine into weights / tables and pre-transpose
    for the lane-dense (batch-on-lanes) kernel layout.

    matmul_dtype=bf16 is recommended on v5e/v6e/v7x (bf16-native MXUs);
    accumulation stays f32 inside the kernel.  Use f32 when bit accuracy
    matters more than speed.
    """
    N, S, D = X.shape
    F, H = params['w1'].shape
    G = len(lys) + 2 * S
    assert F == G * D
    hp = jax.lax.Precision.HIGHEST

    def fold(p):  # eval-mode BN -> (scale, shift)
        g, b, m, v = p
        s = g / jnp.sqrt(v + EPS)
        return s, b - m * s

    u_s = jnp.stack([fold(p)[0] for p in params['u_bn']])          # (S, D)
    u_h = jnp.stack([fold(p)[1] for p in params['u_bn']])
    i_s = jnp.stack([fold(p)[0] for p in params['i_bn']])
    i_h = jnp.stack([fold(p)[1] for p in params['i_bn']])

    Xf = X.astype(jnp.float32)
    xu_flat = (Xf * u_s[None, :, :]).reshape(N, S * D)             # (N, S*D)
    xi_flat = (Xf * i_s[None, :, :]).reshape(N, S * D)
    # block-diagonal gather table: rows 0..N-1 = user side, N..2N-1 = item side
    tab = jnp.zeros((2 * N, 2 * S * D), jnp.float32)
    tab = tab.at[:N, :S * D].set(xu_flat)
    tab = tab.at[N:, S * D:].set(xi_flat)
    tab_t = tab.T                                                  # (2*S*D, 2N)

    shift_t = jnp.concatenate([u_h.reshape(-1), i_h.reshape(-1)]
                              ).reshape(2 * S * D, 1)              # (2*S*D, 1)

    ls, lh = fold(params['lys_bn'])                                # (F,)
    s1, h1 = fold(params['bn1'])                                   # (H,)
    s2, h2 = fold(params['bn2'])

    w1, w2, w3 = params['w1'], params['w2'], params['w3']
    w1f = (ls[:, None] * w1) * s1[None, :]                         # (F, H)
    b1f = (jnp.dot(lh, w1, precision=hp) + params['b1']) * s1 + h1
    w2f = w2 * s2[None, :]
    b2f = params['b2'] * s2 + h2
    w3t = jnp.zeros((8, H), jnp.float32).at[0, :].set(w3[:, 0])    # padded w3^T

    return dict(
        tab_t=tab_t.astype(matmul_dtype),
        shift_t=shift_t.astype(jnp.float32),
        w1t=w1f.T.astype(matmul_dtype),                            # (H, F)
        b1t=b1f.reshape(H, 1).astype(jnp.float32),
        w2t=w2f.T.astype(matmul_dtype),                            # (H, H)
        b2t=b2f.reshape(H, 1).astype(jnp.float32),
        w3t=w3t,                                                   # (8, H) f32
        b3=params['b3'].reshape(1,).astype(jnp.float32),
        meta=dict(S=S, D=D, N=N, H=H, G=G),
    )


# ---------------------------------------------------------------------------
# Forward wrapper: pick tile, pad batch, build specs, call the kernel
# ---------------------------------------------------------------------------
def fullstack_forward(prep, ids, lys, tb=None, max_tb=1024, num_cores=2):
    B = ids.shape[0]
    meta = prep['meta']
    S, D, N, H, G = meta['S'], meta['D'], meta['N'], meta['H'], meta['G']
    assert G == len(lys) + 2 * S

    if tb is None:
        # Balance the "parallel" batch axis across TensorCores (2 on v7x) and
        # keep tiles big: VMEM is not binding for this model.
        per_core = (B + num_cores - 1) // num_cores
        tb = min(((per_core + 127) // 128) * 128, max_tb)
    assert tb % 128 == 0, "tb must be a multiple of 128 (lane-dense blocks)"

    n_tiles = (B + tb - 1) // tb
    B_pad = n_tiles * tb

    # TODO(synk): per-call pad/transpose of ids and the final [:B] slice are
    # small host-side XLA ops; cache the padded buffer if B is fixed in a hot loop.
    ids_t = jnp.zeros((2, B_pad), jnp.int32).at[:, :B].set(ids.astype(jnp.int32).T)

    twoSD = 2 * S * D
    const2 = lambda i: (0, 0)
    in_specs = [
        pl.BlockSpec((2, tb), lambda i: (0, i)),                  # ids (transposed)
        pl.BlockSpec((twoSD, 2 * N), const2),                     # block-diag table^T
        pl.BlockSpec((twoSD, 1), const2),                         # BN shifts^T
        pl.BlockSpec((H, G * D), const2),                         # folded w1^T
        pl.BlockSpec((H, 1), const2),                             # folded b1^T
        pl.BlockSpec((H, H), const2),                             # folded w2^T
        pl.BlockSpec((H, 1), const2),                             # folded b2^T
        pl.BlockSpec((8, H), const2),                             # padded w3^T
        pl.BlockSpec(memory_space=pltpu.MemorySpace.SMEM),        # b3 scalar
    ]
    out_spec = pl.BlockSpec((1, tb), lambda i: (0, i))

    kernel = functools.partial(fullstack_kernel, tuple(lys), S, D)
    out = pl.pallas_call(
        kernel,
        out_shape=jax.ShapeDtypeStruct((1, B_pad), jnp.float32),
        grid_spec=pltpu.PrefetchScalarGridSpec(
            num_scalar_prefetch=0,
            grid=(n_tiles,),
            in_specs=in_specs,
            out_specs=out_spec,
        ),
        compiler_params=pltpu.CompilerParams(
            dimension_semantics=("parallel",)),
    )(ids_t, prep['tab_t'], prep['shift_t'], prep['w1t'], prep['b1t'],
      prep['w2t'], prep['b2t'], prep['w3t'], prep['b3'])

    return out[0, :B].reshape(B, 1)


# ---------------------------------------------------------------------------
# Pure-JAX reference (mirrors the PyTorch forward in eval mode)
# ---------------------------------------------------------------------------
def reference(X, ids, params, lys):
    hp = jax.lax.Precision.HIGHEST

    def bn(x, p):
        g, b, m, v = p
        return (x - m) / jnp.sqrt(v + EPS) * g + b

    def lrelu(x):
        return jnp.where(x >= 0, x, NEG_SLOPE * x)

    xu_e = X[ids[:, 0]]
    xi_e = X[ids[:, 1]]
    xu = [bn(xu_e[:, k, :], params['u_bn'][k]) for k in range(3)]
    xi = [bn(xi_e[:, k, :], params['i_bn'][k]) for k in range(3)]
    p_list = [xu[a] * xi[b] for (a, b) in lys] + xu + xi
    x = bn(jnp.concatenate(p_list, axis=-1), params['lys_bn'])
    h = lrelu(bn(jnp.dot(x, params['w1'], precision=hp) + params['b1'], params['bn1']))
    h = lrelu(bn(jnp.dot(h, params['w2'], precision=hp) + params['b2'], params['bn2']))
    return jnp.dot(h, params['w3'], precision=hp) + params['b3']


# ---------------------------------------------------------------------------
# Deterministic parameter construction
# ---------------------------------------------------------------------------
def init_bn(key, dim):
    k1, k2, k3, k4 = jax.random.split(key, 4)
    gamma = jax.random.uniform(k1, (dim,), minval=0.8, maxval=1.2, dtype=jnp.float32)
    beta = jax.random.uniform(k2, (dim,), minval=-0.1, maxval=0.1, dtype=jnp.float32)
    mean = jax.random.uniform(k3, (dim,), minval=-0.1, maxval=0.1, dtype=jnp.float32)
    var = jax.random.uniform(k4, (dim,), minval=0.9, maxval=1.1, dtype=jnp.float32)
    return (gamma, beta, mean, var)


def xavier(key, fan_in, fan_out):
    limit = (6.0 / (fan_in + fan_out)) ** 0.5
    return jax.random.uniform(key, (fan_in, fan_out),
                              minval=-limit, maxval=limit, dtype=jnp.float32)


if __name__ == "__main__":
    # Embedding table X is (N, 3, D); ids is (B, 2).  B deliberately not a
    # multiple of the batch tile to exercise the padded tail.
    N, D, B, H = 64, 32, 520, 64
    lys = [(i, j) for i in range(3) for j in range(3)]   # all 9 (i, j) layer pairs
    F = (len(lys) + 6) * D

    key = jax.random.PRNGKey(0)
    keys = jax.random.split(key, 20)

    X = jax.random.normal(keys[0], (N, 3, D), dtype=jnp.float32)
    ids = jax.random.randint(keys[1], (B, 2), 0, N)

    params = {
        'u_bn': [init_bn(keys[2 + k], D) for k in range(3)],
        'i_bn': [init_bn(keys[5 + k], D) for k in range(3)],
        'lys_bn': init_bn(keys[8], F),
        'w1': xavier(keys[9], F, H),
        'b1': jax.random.uniform(keys[10], (H,), minval=-0.05, maxval=0.05, dtype=jnp.float32),
        'bn1': init_bn(keys[11], H),
        'w2': xavier(keys[12], H, H),
        'b2': jax.random.uniform(keys[13], (H,), minval=-0.05, maxval=0.05, dtype=jnp.float32),
        'bn2': init_bn(keys[14], H),
        'w3': xavier(keys[15], H, 1),
        'b3': jax.random.uniform(keys[16], (1,), minval=-0.05, maxval=0.05, dtype=jnp.float32),
    }

    ref = reference(X, ids, params, lys)

    # f32 matmul-operand path (accuracy-critical serving)
    prep_f32 = prepare_params(X, params, lys, matmul_dtype=jnp.float32)
    out = jax.block_until_ready(fullstack_forward(prep_f32, ids, lys))
    assert out.shape == (B, 1), out.shape
    assert bool(jnp.all(jnp.isfinite(out)))
    assert bool(jnp.allclose(out, ref, rtol=1e-2, atol=1e-2))

    # bf16 MXU-operand path (recommended on v5e/v6e/v7x); accumulation stays f32.
    prep_bf16 = prepare_params(X, params, lys, matmul_dtype=jnp.bfloat16)
    out_bf16 = jax.block_until_ready(fullstack_forward(prep_bf16, ids, lys))
    assert out_bf16.shape == (B, 1)
    assert bool(jnp.all(jnp.isfinite(out_bf16)))
    assert bool(jnp.allclose(out_bf16, ref, rtol=1e-1, atol=1e-1))

    print("KERNEL_OK")
</pallas_src>

<mosaic_0001>
module attributes {stable_mosaic.version = 11 : i64} {
  func.func @fullstack_kernel(%arg0: i32, %arg1: memref<2x384xi32, #tpu.memory_space<vmem>>, %arg2: memref<192x128xf32, #tpu.memory_space<vmem>>, %arg3: memref<192x1xf32, #tpu.memory_space<vmem>>, %arg4: memref<64x480xf32, #tpu.memory_space<vmem>>, %arg5: memref<64x1xf32, #tpu.memory_space<vmem>>, %arg6: memref<64x64xf32, #tpu.memory_space<vmem>>, %arg7: memref<64x1xf32, #tpu.memory_space<vmem>>, %arg8: memref<8x64xf32, #tpu.memory_space<vmem>>, %arg9: memref<1xf32, #tpu.memory_space<smem>>, %arg10: memref<1x384xf32, #tpu.memory_space<vmem>>) attributes {dimension_semantics = [#tpu.dimension_semantics<parallel>], iteration_bounds = array<i64: 2>, scalar_prefetch = 0 : i64, scratch_operands = 0 : i64, tpu.core_type = #tpu.core_type<tc>, window_params = [{transform_indices = @transform_0, window_bounds = array<i64: 2, 384>}, {pipeline_mode = #tpu.pipeline_mode<synchronous>, transform_indices = @transform_1, window_bounds = array<i64: 192, 128>}, {pipeline_mode = #tpu.pipeline_mode<synchronous>, transform_indices = @transform_2, window_bounds = array<i64: 192, 1>}, {pipeline_mode = #tpu.pipeline_mode<synchronous>, transform_indices = @transform_3, window_bounds = array<i64: 64, 480>}, {pipeline_mode = #tpu.pipeline_mode<synchronous>, transform_indices = @transform_4, window_bounds = array<i64: 64, 1>}, {pipeline_mode = #tpu.pipeline_mode<synchronous>, transform_indices = @transform_5, window_bounds = array<i64: 64, 64>}, {pipeline_mode = #tpu.pipeline_mode<synchronous>, transform_indices = @transform_6, window_bounds = array<i64: 64, 1>}, {pipeline_mode = #tpu.pipeline_mode<synchronous>, transform_indices = @transform_7, window_bounds = array<i64: 8, 64>}, {transform_indices = @transform_8, window_bounds = array<i64: 1>}, {transform_indices = @transform_9, window_bounds = array<i64: 1, 384>}]} {
    %c0 = arith.constant 0 : index
    %c0_0 = arith.constant 0 : index
    %0 = vector.load %arg1[%c0, %c0_0] : memref<2x384xi32, #tpu.memory_space<vmem>>, vector<1x384xi32>
    %c1 = arith.constant 1 : index
    %c0_1 = arith.constant 0 : index
    %1 = vector.load %arg1[%c1, %c0_1] : memref<2x384xi32, #tpu.memory_space<vmem>>, vector<1x384xi32>
    %2 = tpu.iota {dimensions = array<i32: 0>} : vector<128x384xi32>
    %c64_i32 = arith.constant 64 : i32
    %3 = vector.broadcast %c64_i32 : i32 to vector<128x384xi32>
    %4 = arith.cmpi slt, %2, %3 : vector<128x384xi32>
    %c64_i32_2 = arith.constant 64 : i32
    %5 = vector.broadcast %c64_i32_2 : i32 to vector<1x384xi32>
    %6 = arith.addi %1, %5 : vector<1x384xi32>
    %7 = vector.shape_cast %0 : vector<1x384xi32> to vector<1x384xi32>
    %8 = vector.broadcast %7 : vector<1x384xi32> to vector<128x384xi32>
    %9 = vector.shape_cast %6 : vector<1x384xi32> to vector<1x384xi32>
    %10 = vector.broadcast %9 : vector<1x384xi32> to vector<128x384xi32>
    %11 = arith.select %4, %8, %10 : vector<128x384xi1>, vector<128x384xi32>
    %12 = arith.cmpi eq, %2, %11 : vector<128x384xi32>
    %13 = arith.extui %12 : vector<128x384xi1> to vector<128x384xi32>
    %14 = arith.sitofp %13 : vector<128x384xi32> to vector<128x384xf32>
    %c0_3 = arith.constant 0 : index
    %c0_4 = arith.constant 0 : index
    %15 = vector.load %arg2[%c0_3, %c0_4] : memref<192x128xf32, #tpu.memory_space<vmem>>, vector<192x128xf32>
    %cst = arith.constant dense<0.000000e+00> : vector<192x384xf32>
    %16 = tpu.matmul %15, %14, %cst {dimension_numbers = #tpu.dot_dimension_numbers<[1], [0], [0], [1], [0, 0, 1, 1], [], []>} : vector<192x128xf32>, vector<128x384xf32>, vector<192x384xf32> -> vector<192x384xf32>
    %c0_5 = arith.constant 0 : index
    %c0_6 = arith.constant 0 : index
    %17 = vector.load %arg3[%c0_5, %c0_6] : memref<192x1xf32, #tpu.memory_space<vmem>>, vector<192x1xf32>
    %18 = vector.broadcast %17 : vector<192x1xf32> to vector<192x384xf32>
    %19 = arith.addf %16, %18 : vector<192x384xf32>
    %20 = vector.extract_strided_slice %19 {offsets = [0, 0], sizes = [32, 384], strides = [1, 1]} : vector<192x384xf32> to vector<32x384xf32>
    %21 = vector.extract_strided_slice %19 {offsets = [96, 0], sizes = [32, 384], strides = [1, 1]} : vector<192x384xf32> to vector<32x384xf32>
    %22 = arith.mulf %20, %21 : vector<32x384xf32>
    %23 = vector.extract_strided_slice %19 {offsets = [0, 0], sizes = [32, 384], strides = [1, 1]} : vector<192x384xf32> to vector<32x384xf32>
    %24 = vector.extract_strided_slice %19 {offsets = [128, 0], sizes = [32, 384], strides = [1, 1]} : vector<192x384xf32> to vector<32x384xf32>
    %25 = arith.mulf %23, %24 : vector<32x384xf32>
    %26 = vector.extract_strided_slice %19 {offsets = [0, 0], sizes = [32, 384], strides = [1, 1]} : vector<192x384xf32> to vector<32x384xf32>
    %27 = vector.extract_strided_slice %19 {offsets = [160, 0], sizes = [32, 384], strides = [1, 1]} : vector<192x384xf32> to vector<32x384xf32>
    %28 = arith.mulf %26, %27 : vector<32x384xf32>
    %29 = vector.extract_strided_slice %19 {offsets = [32, 0], sizes = [32, 384], strides = [1, 1]} : vector<192x384xf32> to vector<32x384xf32>
    %30 = vector.extract_strided_slice %19 {offsets = [96, 0], sizes = [32, 384], strides = [1, 1]} : vector<192x384xf32> to vector<32x384xf32>
    %31 = arith.mulf %29, %30 : vector<32x384xf32>
    %32 = vector.extract_strided_slice %19 {offsets = [32, 0], sizes = [32, 384], strides = [1, 1]} : vector<192x384xf32> to vector<32x384xf32>
    %33 = vector.extract_strided_slice %19 {offsets = [128, 0], sizes = [32, 384], strides = [1, 1]} : vector<192x384xf32> to vector<32x384xf32>
    %34 = arith.mulf %32, %33 : vector<32x384xf32>
    %35 = vector.extract_strided_slice %19 {offsets = [32, 0], sizes = [32, 384], strides = [1, 1]} : vector<192x384xf32> to vector<32x384xf32>
    %36 = vector.extract_strided_slice %19 {offsets = [160, 0], sizes = [32, 384], strides = [1, 1]} : vector<192x384xf32> to vector<32x384xf32>
    %37 = arith.mulf %35, %36 : vector<32x384xf32>
    %38 = vector.extract_strided_slice %19 {offsets = [64, 0], sizes = [32, 384], strides = [1, 1]} : vector<192x384xf32> to vector<32x384xf32>
    %39 = vector.extract_strided_slice %19 {offsets = [96, 0], sizes = [32, 384], strides = [1, 1]} : vector<192x384xf32> to vector<32x384xf32>
    %40 = arith.mulf %38, %39 : vector<32x384xf32>
    %41 = vector.extract_strided_slice %19 {offsets = [64, 0], sizes = [32, 384], strides = [1, 1]} : vector<192x384xf32> to vector<32x384xf32>
    %42 = vector.extract_strided_slice %19 {offsets = [128, 0], sizes = [32, 384], strides = [1, 1]} : vector<192x384xf32> to vector<32x384xf32>
    %43 = arith.mulf %41, %42 : vector<32x384xf32>
    %44 = vector.extract_strided_slice %19 {offsets = [64, 0], sizes = [32, 384], strides = [1, 1]} : vector<192x384xf32> to vector<32x384xf32>
    %45 = vector.extract_strided_slice %19 {offsets = [160, 0], sizes = [32, 384], strides = [1, 1]} : vector<192x384xf32> to vector<32x384xf32>
    %46 = arith.mulf %44, %45 : vector<32x384xf32>
    %47 = tpu.concatenate %22, %25, %28, %31, %34, %37, %40, %43, %46, %19 in 0 : vector<32x384xf32>, vector<32x384xf32>, vector<32x384xf32>, vector<32x384xf32>, vector<32x384xf32>, vector<32x384xf32>, vector<32x384xf32>, vector<32x384xf32>, vector<32x384xf32>, vector<192x384xf32> -> vector<480x384xf32>
    %c0_7 = arith.constant 0 : index
    %c0_8 = arith.constant 0 : index
    %48 = vector.load %arg4[%c0_7, %c0_8] : memref<64x480xf32, #tpu.memory_space<vmem>>, vector<64x480xf32>
    %cst_9 = arith.constant dense<0.000000e+00> : vector<64x384xf32>
    %49 = tpu.matmul %48, %47, %cst_9 {dimension_numbers = #tpu.dot_dimension_numbers<[1], [0], [0], [1], [0, 0, 1, 1], [], []>} : vector<64x480xf32>, vector<480x384xf32>, vector<64x384xf32> -> vector<64x384xf32>
    %c0_10 = arith.constant 0 : index
    %c0_11 = arith.constant 0 : index
    %50 = vector.load %arg5[%c0_10, %c0_11] : memref<64x1xf32, #tpu.memory_space<vmem>>, vector<64x1xf32>
    %51 = vector.broadcast %50 : vector<64x1xf32> to vector<64x384xf32>
    %52 = arith.addf %49, %51 : vector<64x384xf32>
    %cst_12 = arith.constant 0.000000e+00 : f32
    %53 = vector.broadcast %cst_12 : f32 to vector<64x384xf32>
    %54 = arith.cmpf oge, %52, %53 : vector<64x384xf32>
    %cst_13 = arith.constant 0.00999999977 : f32
    %55 = vector.broadcast %cst_13 : f32 to vector<64x384xf32>
    %56 = arith.mulf %55, %52 : vector<64x384xf32>
    %57 = arith.select %54, %52, %56 : vector<64x384xi1>, vector<64x384xf32>
    %c0_14 = arith.constant 0 : index
    %c0_15 = arith.constant 0 : index
    %58 = vector.load %arg6[%c0_14, %c0_15] : memref<64x64xf32, #tpu.memory_space<vmem>>, vector<64x64xf32>
    %cst_16 = arith.constant dense<0.000000e+00> : vector<64x384xf32>
    %59 = tpu.matmul %58, %57, %cst_16 {dimension_numbers = #tpu.dot_dimension_numbers<[1], [0], [0], [1], [0, 0, 1, 1], [], []>} : vector<64x64xf32>, vector<64x384xf32>, vector<64x384xf32> -> vector<64x384xf32>
    %c0_17 = arith.constant 0 : index
    %c0_18 = arith.constant 0 : index
    %60 = vector.load %arg7[%c0_17, %c0_18] : memref<64x1xf32, #tpu.memory_space<vmem>>, vector<64x1xf32>
    %61 = vector.broadcast %60 : vector<64x1xf32> to vector<64x384xf32>
    %62 = arith.addf %59, %61 : vector<64x384xf32>
    %cst_19 = arith.constant 0.000000e+00 : f32
    %63 = vector.broadcast %cst_19 : f32 to vector<64x384xf32>
    %64 = arith.cmpf oge, %62, %63 : vector<64x384xf32>
    %cst_20 = arith.constant 0.00999999977 : f32
    %65 = vector.broadcast %cst_20 : f32 to vector<64x384xf32>
    %66 = arith.mulf %65, %62 : vector<64x384xf32>
    %67 = arith.select %64, %62, %66 : vector<64x384xi1>, vector<64x384xf32>
    %c0_21 = arith.constant 0 : index
    %c0_22 = arith.constant 0 : index
    %68 = vector.load %arg8[%c0_21, %c0_22] : memref<8x64xf32, #tpu.memory_space<vmem>>, vector<8x64xf32>
    %cst_23 = arith.constant dense<0.000000e+00> : vector<8x384xf32>
    %69 = tpu.matmul %68, %67, %cst_23 {dimension_numbers = #tpu.dot_dimension_numbers<[1], [0], [0], [1], [0, 0, 1, 1], [], []>} : vector<8x64xf32>, vector<64x384xf32>, vector<8x384xf32> -> vector<8x384xf32>
    %70 = vector.extract_strided_slice %69 {offsets = [0, 0], sizes = [1, 384], strides = [1, 1]} : vector<8x384xf32> to vector<1x384xf32>
    %c0_24 = arith.constant 0 : index
    %71 = memref.load %arg9[%c0_24] : memref<1xf32, #tpu.memory_space<smem>>
    %72 = vector.broadcast %71 : f32 to vector<1x384xf32>
    %73 = arith.addf %70, %72 : vector<1x384xf32>
    %c0_25 = arith.constant 0 : index
    %c0_26 = arith.constant 0 : index
    %74 = vector.load %arg10[%c0_25, %c0_26] : memref<1x384xf32, #tpu.memory_space<vmem>>, vector<1x384xf32>
    tpu.vector_store %arg10[%c0_25, %c0_26], %73 {strides = array<i32>} : memref<1x384xf32, #tpu.memory_space<vmem>>, vector<1x384xf32>,
    return
  }
  func.func @transform_0(%arg0: i32) -> (i32, i32) {
    %c0_i32 = arith.constant 0 : i32
    %c0_i32_0 = arith.constant 0 : i32
    return %c0_i32, %arg0 : i32, i32
  }
  func.func @transform_1(%arg0: i32) -> (i32, i32) {
    %c0_i32 = arith.constant 0 : i32
    %c0_i32_0 = arith.constant 0 : i32
    %c0_i32_1 = arith.constant 0 : i32
    return %c0_i32, %c0_i32_0 : i32, i32
  }
  func.func @transform_2(%arg0: i32) -> (i32, i32) {
    %c0_i32 = arith.constant 0 : i32
    %c0_i32_0 = arith.constant 0 : i32
    %c0_i32_1 = arith.constant 0 : i32
    return %c0_i32, %c0_i32_0 : i32, i32
  }
  func.func @transform_3(%arg0: i32) -> (i32, i32) {
    %c0_i32 = arith.constant 0 : i32
    %c0_i32_0 = arith.constant 0 : i32
    %c0_i32_1 = arith.constant 0 : i32
    return %c0_i32, %c0_i32_0 : i32, i32
  }
  func.func @transform_4(%arg0: i32) -> (i32, i32) {
    %c0_i32 = arith.constant 0 : i32
    %c0_i32_0 = arith.constant 0 : i32
    %c0_i32_1 = arith.constant 0 : i32
    return %c0_i32, %c0_i32_0 : i32, i32
  }
  func.func @transform_5(%arg0: i32) -> (i32, i32) {
    %c0_i32 = arith.constant 0 : i32
    %c0_i32_0 = arith.constant 0 : i32
    %c0_i32_1 = arith.constant 0 : i32
    return %c0_i32, %c0_i32_0 : i32, i32
  }
  func.func @transform_6(%arg0: i32) -> (i32, i32) {
    %c0_i32 = arith.constant 0 : i32
    %c0_i32_0 = arith.constant 0 : i32
    %c0_i32_1 = arith.constant 0 : i32
    return %c0_i32, %c0_i32_0 : i32, i32
  }
  func.func @transform_7(%arg0: i32) -> (i32, i32) {
    %c0_i32 = arith.constant 0 : i32
    %c0_i32_0 = arith.constant 0 : i32
    %c0_i32_1 = arith.constant 0 : i32
    return %c0_i32, %c0_i32_0 : i32, i32
  }
  func.func @transform_8(%arg0: i32) -> i32 {
    %c0_i32 = arith.constant 0 : i32
    %c0_i32_0 = arith.constant 0 : i32
    return %c0_i32 : i32
  }
  func.func @transform_9(%arg0: i32) -> (i32, i32) {
    %c0_i32 = arith.constant 0 : i32
    %c0_i32_0 = arith.constant 0 : i32
    return %c0_i32, %arg0 : i32, i32
  }
}

</mosaic_0001>

<bundles_post_ra>
// kernel: tpu_custom_call.1
= control target key start
LH: loop header
LB: loop body
LE: loop exit
PB: predicated region body
PF: predicated region fallthrough
CT: control target
= control target key end

     0   :  { %s5379_s0 = inlined_call_operand.vmem [shape: s32[2,768], index: 0, kind: input, shape index: {}]   ;;  %s5380_s1 = inlined_call_operand.hbm [shape: f32[192,128], index: 1, kind: input, shape index: {}]   ;;  %s5381_s2 = inlined_call_operand.vmem [shape: f32[192,1], index: 2, kind: input, shape index: {}]   ;;  %s5382_s3 = inlined_call_operand.vmem [shape: f32[64,480], index: 3, kind: input, shape index: {}]   ;;  %s5383_s4 = inlined_call_operand.vmem [shape: f32[64,1], index: 4, kind: input, shape index: {}]   ;;  %s5384_s5 = inlined_call_operand.vmem [shape: f32[64,64], index: 5, kind: input, shape index: {}]   ;;  %s5385_s6 = inlined_call_operand.vmem [shape: f32[64,1], index: 6, kind: input, shape index: {}]   ;;  %s5386_s7 = inlined_call_operand.vmem [shape: f32[8,64], index: 7, kind: input, shape index: {}]   ;;  %s5387_s8 = inlined_call_operand.<no memory space> [shape: f32[1], index: 8, kind: input, shape index: {}]   ;;  %s5388_s9 = inlined_call_operand.hbm [shape: f32[1,768], index: 9, kind: output, shape index: {}]  }
   0x1   :  { %14 = sst [smem:[#allocation2]] %s5387_s8 }
   0x2   :  { %15 = vsyncpa [#allocation4], 0 }
   0x3   :  { %16 = vsyncpa [#allocation5], 0 }
   0x4   :  { %18 = vsyncpa [#allocation5 + $0x1], 0  ;;  %s3473_s11 = smov 0   ;;  %s3475_s12 = smov 0  }
   0x5   :  { %s3477_s13 = smov 0   ;;  %s3479_s14 = smov 0  }
   0x6 LB: > { %s3494_s8 = sadd.s32 4294967295, %s3408_s14   ;;  %s2525_s15 = sadd.s32 4294967294, %s3408_s14   ;;  %s3408_s14 = sphi %s3479_s14, %s5796_s14   ;;  %s3404_s13 = sphi %s3477_s13, %s5795_s13   ;;  %s3400_s12 = sphi %s3475_s12, %s5794_s12   ;;  %s3396_s11 = sphi %s3473_s11, %s5793_s11  }
   0x7   : > { %s3498_s16 = sadd.s32 1, %s3408_s14   ;;  %s225_s17 = sadd.s32 1, %s3404_s13 }
   0x8   : > { %s222_s18 = ssub.s32 %s3408_s14, %s3498_s16  ;;  %p235_p0 = scmp.ne.s32.totalorder %s3404_s13, %s3400_s12 }
   0x9   : > { %p223_p1 = scmp.eq.s32.totalorder %s222_s18, 0  ;;  %p236_p2 = scmp.eq.s32.totalorder %s3494_s8, 1 }
   0xa   : > { %p241_p3 = scmp.ne.s32.totalorder %s3400_s12, %s3396_s11  ;;  %p242_p4 = scmp.eq.s32.totalorder %s2525_s15, 1 }
   0xb   : > { %s3509_s19 = scalar_select %p223_p1, %s3404_s13, %s225_s17  }
   0xc   : > { %p3511_p5 = por %p236_p2, %p235_p0  ;;  %p3515_p6 = por %p242_p4, %p241_p3 }
   0xd   : > { %p2526_p7 = scmp.ge.s32.totalorder %s3408_s14, 1  ;;  %p249_p8 = scmp.lt.s32.totalorder %s3408_s14, 3 }
   0xe   : > { %s5502_s20 = scalar_select %p3511_p5, 1, 0 }
   0xf   : > { %s5503_s21 = scalar_select %p3515_p6, 1, 0 }
  0x10   : > { %p5389_p9 = scmp.eq.s32.totalorder %s3494_s8, 0  ;;  %p3522_p10 = pnand %p2526_p7, %p249_p8 }
  0x11   : > { %s3410_s23 = smov [#allocation3]   ;;  %s3314_s28 = scalar_lea.hbm %s5380_s1, 3072 }
  0x12   : > { %s5504_s22 = scalar_select %p3522_p10, 1, 0 }
  0x13   : > { %s261_s24 = sshll.u32 %s3410_s23, 4  ;;  %p3260_p11 = pneg %p3522_p10  ;;  %s262_s24 = int_to_ptr.vmem [resolvable:$true] %s261_s24 }
  0x14   : > { %p3315_p13 = scmp.ne.s32.totalorder %s5380_s1, %s3314_s28  ;;  %p3321_p3 = scmp.lt.u32.totalorder %s3314_s28, %s5380_s1 }
  0x15   : > { %p3530_p12 = pnand %p5389_p9, %p3260_p11 }
  0x17   : > { %p3316_p0 = pneg %p3530_p12 }
  0x19   : > { %p3317_p1 = pnand %p3316_p0, %p3315_p13 }
  0x1b   : > { %p3318_p2 = pneg %p3317_p1 }
  0x1d   : > { %p3323_p4 = pnand %p3321_p3, %p3318_p2 }
  0x1f   : > { %3326 = shalt.err (!%p3323_p4)
}
  0x20   : > { %s3327_s17 = scalar_lea.vmem %s262_s24, 3072  ;;  %p3335_p9 = scmp.lt.s32.totalorder %s262_s24, %s262_s24 }
  0x21   : > { %p3328_p7 = scmp.ne.s32.totalorder %s262_s24, %s3327_s17  ;;  %p3336_p6 = scmp.lt.s32.totalorder %s3327_s17, %s3327_s17 }
  0x23   : > { %p3330_p8 = pnand %p3328_p7, %p3316_p0  ;;  %p3337_p5 = por %p3336_p6, %p3335_p9 }
  0x25   : > { %p3331_p11 = pneg %p3330_p8 }
  0x27   : > { %p3338_p10 = pnand %p3337_p5, %p3331_p11 }
  0x29   : > { %3341 = shalt.err (!%p3338_p10)
}
  0x2a   : > { %s3411_s18 = smov 128   ;;  %s3412_s23 = smov 8  }
  0x2b   : > { %3263 = dma.hbm_to_vmem [thread:$0]  (!%p3530_p12), %s5380_s1, 3072, %s262_s24, [#allocation4], %s3411_s18, %s3411_s18, %s3412_s23  }
  0x2c   : > { %p5506_p13 = scmp.ne.s32.totalorder %s5504_s22, 0 }
  0x2e   : > { %307 = sbr.rel (%p5506_p13) target bundleno = 1253 (0x4e5), region = 56 }
  0x35   : > { %p5507_p1 = scmp.eq.s32.totalorder %s3494_s8, 0 }
  0x37   : > { %3387 = dma.done.wait (%p5507_p1), [#allocation4], 3072   ;;  %p5508_p0 = pmov %p5507_p1 }
  0x38   : > { %s343_s28 = smul.u32 3, %s3494_s8  ;;  %v5392_v0 = vlaneseq  ;;  %v5393_v1 = vmov 0.0   ;;  %v3414_v3 = vmov 0   ;;  %v3568_v8 = vld [vmem:[#allocation3] sm:$0xff]  ;;  %v3415_v19 = vmov 1.0|1.0  }
  0x39   : > { %3389 = vsyncadd (%p5508_p0), [#allocation4], 4294964224  ;;  %835 = vmatprep.mubr.f32.mxu0 %v5393_v1  ;;  %3313 = vset.pattern.permute.xlu1 %v3414_v3  ;;  %v639_v26 = vld [vmem:[%s5381_s2 + $0x60] sm:$0xff]  ;;  %v640_v30 = vld [vmem:[%s5381_s2 + $0x68] sm:$0xff]  ;;  %s2402_s26 = sld [smem:[#allocation2]]  ;;  %s340_s27 = sand.u32 1, %s3400_s12  }
  0x3a   : > { %p344_p5 = scmp.lt.s32.totalorder %s343_s28, 5  ;;  %v3559_v2 = vshrl.u32 %v5392_v0, 7  ;;  %3312 = vset.pattern.permute.xlu0 %v3414_v3  ;;  %2820 = vmatprep.mubr.f32.mxu1 %v3568_v8  ;;  %v627_v28 = vld [vmem:[%s5381_s2] sm:$0xff]  ;;  %v628_v35 = vld [vmem:[%s5381_s2 + $0x8] sm:$0xff]  ;;  %v630_v37 = vld [vmem:[%s5381_s2 + $0x18] sm:$0xff]  ;;  %s2440_s15 = scalar_lea.sflag [#allocation5], %s340_s27 }
  0x3b   : > { %713 = vperm.xlu1 %3313, %v639_v26   ;;  %653 = vperm.xlu0 %3312, %v627_v28   ;;  %v629_v42 = vld [vmem:[%s5381_s2 + $0x10] sm:$0xff]  ;;  %v642_v44 = vld [vmem:[%s5381_s2 + $0x78] sm:$0xff]  ;;  %v644_v50 = vld [vmem:[%s5381_s2 + $0x88] sm:$0xff]  ;;  %p5791_p9 = scmp.ne.s32.totalorder %s5502_s20, 0 }
  0x3c   : > { %5509 = vst [vmem:[#allocation9_spill] sm:$0xff] %v3559_v2  ;;  %s5798_s28 = smov (!%p344_p5, %s343_s28), 5  ;;  %v393_v4 = vsub.s32 1, %v3559_v2  ;;  %v397_v5 = vsub.s32 2, %v3559_v2  ;;  %v389_v6 = vsub.s32 0, %v3559_v2  ;;  %v355_v7 = vadd.s32 8, %v3559_v2 }
  0x3d   : > { %s2531_s22 = sshll.u32 %s5798_s28, 1  ;;  %v356_v10 = vadd.s32 16, %v3559_v2  ;;  %v357_v11 = vadd.s32 24, %v3559_v2  ;;  %v358_v16 = vadd.s32 32, %v3559_v2  ;;  %v359_v17 = vadd.s32 40, %v3559_v2  ;;  %v641_v49 = vld [vmem:[%s5381_s2 + $0x70] sm:$0xff] }
  0x3e   : > { %s347_s29 = scalar_lea.vmem %s5379_s0, %s2531_s22  ;;  %v360_v20 = vadd.s32 48, %v3559_v2  ;;  %v361_v21 = vadd.s32 56, %v3559_v2  ;;  %v362_v23 = vadd.s32 64, %v3559_v2  ;;  %v363_v24 = vadd.s32 72, %v3559_v2  ;;  %v643_v52 = vld [vmem:[%s5381_s2 + $0x80] sm:$0xff]  ;;  %v646_v53 = vld [vmem:[%s5381_s2 + $0x98] sm:$0xff] }
  0x3f   : > { %v350_v9 = vld [vmem:[%s347_s29] ss:$2 sm:$0x7]  ;;  %v2532_v15 = vld [vmem:[%s347_s29 + $0x1] ss:$2 sm:$0x7]  ;;  %718 = vperm.xlu1 %3313, %v640_v30   ;;  %658 = vperm.xlu0 %3312, %v628_v35  }
  0x40   : > { %v394_v12 = vrot.slane %v350_v9, %v393_v4  ;;  %v3573_v13 = vrot.slane %v350_v9, %v397_v5  ;;  %v3577_v14 = vrot.slane %v350_v9, %v389_v6  ;;  %v386_v18 = vadd.s32 64, %v2532_v15  ;;  %v645_v55 = vld [vmem:[%s5381_s2 + $0x90] sm:$0xff]  ;;  %v648_v56 = vld [vmem:[%s5381_s2 + $0xa8] sm:$0xff]  ;;  %v647_v57 = vld [vmem:[%s5381_s2 + $0xa0] sm:$0xff]  ;;  %s3253_s28 = smul.u32 3, %s340_s27 }
  0x41   : > { %v364_v32 = vadd.s32 80, %v3559_v2  ;;  %v365_v33 = vadd.s32 88, %v3559_v2  ;;  %v366_v40 = vadd.s32 96, %v3559_v2  ;;  %v367_v41 = vadd.s32 104, %v3559_v2  ;;  %v604_v58 = vld [vmem:[#allocation3 + $0x8] sm:$0xff]  ;;  %v605_v59 = vld [vmem:[#allocation3 + $0x10] sm:$0xff] }
  0x42   : > { %vm460_vm0 = vcmp.eq.s32.totalorder %v3559_v2, %v394_v12  ;;  %vm463_vm1 = vcmp.eq.s32.totalorder %v355_v7, %v394_v12  ;;  %vm461_vm2 = vcmp.eq.s32.totalorder %v3559_v2, %v3573_v13  ;;  %vm464_vm3 = vcmp.eq.s32.totalorder %v355_v7, %v3573_v13  ;;  %v650_v60 = vld [vmem:[%s5381_s2 + $0xb8] sm:$0xff]  ;;  %v649_v61 = vld [vmem:[%s5381_s2 + $0xb0] sm:$0xff]  ;;  %v607_v63 = vld [vmem:[#allocation3 + $0x20] sm:$0xff]  ;;  %s2666_s22 = smul.u32 48, %s3494_s8  ;;  %s342_s24 = scalar_lea.vmem [#allocation6], %s3253_s28 }
  0x43   : > { %vm2903_vm4 = vmpackc.low %vm463_vm1, %vm460_vm0  ;;  %vm459_vm5 = vcmp.eq.s32.totalorder %v3559_v2, %v3577_v14  ;;  %vm462_vm6 = vcmp.eq.s32.totalorder %v355_v7, %v3577_v14  ;;  %vm466_vm7 = vcmp.eq.s32.totalorder %v356_v10, %v394_v12  ;;  %vm469_vm8 = vcmp.eq.s32.totalorder %v357_v11, %v394_v12  ;;  %668 = vperm.xlu1 %3313, %v630_v37   ;;  %v606_v62 = vld [vmem:[#allocation3 + $0x18] sm:$0xff]  ;;  %v632_v3 = vld [vmem:[%s5381_s2 + $0x28] sm:$0xff]  ;;  %s2454_s25 = sshll.u32 %s342_s24, 4  ;;  %s3419_s8 = smov [#allocation6]   ;;  %s5339_s25 = int_to_ptr.vmem [resolvable:$true] %s2454_s25 }
  0x44   : > { %2904 = vmatprep.subr.msk.bf16.mxu0 %vm2903_vm4, %v3415_v19  ;;  %vm2935_vm9 = vmpackc.low %vm464_vm3, %vm461_vm2  ;;  %vm467_vm10 = vcmp.eq.s32.totalorder %v356_v10, %v3573_v13  ;;  %vm470_vm11 = vcmp.eq.s32.totalorder %v357_v11, %v3573_v13  ;;  %vm465_vm13 = vcmp.eq.s32.totalorder %v356_v10, %v3577_v14  ;;  %vm468_vm14 = vcmp.eq.s32.totalorder %v357_v11, %v3577_v14  ;;  %v634_v7 = vld [vmem:[%s5381_s2 + $0x38] sm:$0xff]  ;;  %v611_v10 = vld [vmem:[#allocation3 + $0x40] sm:$0xff]  ;;  %s5337_s10 = scalar_lea.hbm %s5388_s9, %s2666_s22  ;;  %s3342_s17 = scalar_lea.vmem %s5339_s25, 48 }
  0x45   : > { %2936 = vmatprep.subr.msk.bf16.mxu1 %vm2935_vm9, %v3415_v19  ;;  %vm2905_vm12 = vmpackc.low %vm462_vm6, %vm459_vm5  ;;  %vm472_vm0 = vcmp.eq.s32.totalorder %v358_v16, %v394_v12  ;;  %vm475_vm1 = vcmp.eq.s32.totalorder %v359_v17, %v394_v12  ;;  %vm473_vm3 = vcmp.eq.s32.totalorder %v358_v16, %v3573_v13  ;;  %vm476_vm4 = vcmp.eq.s32.totalorder %v359_v17, %v3573_v13  ;;  %v610_v9 = vld [vmem:[#allocation3 + $0x38] sm:$0xff]  ;;  %v636_v11 = vld [vmem:[%s5381_s2 + $0x48] sm:$0xff]  ;;  %p3343_p6 = scmp.ne.s32.totalorder %s5339_s25, %s3342_s17  ;;  %s3346_s18 = sshll.u32 %s3419_s8, 4  ;;  %s3347_s18 = int_to_ptr.vmem [resolvable:$false] %s3346_s18 }
  0x46   : > { %2906 = vmatpush1.bf16.msk.msra.mxu0 %vm2905_vm12, %v3415_v19  ;;  %2938 = vmatpush3.bf16.msk.msra.mxu1 %vm2935_vm9, %v3415_v19  ;;  %vm2907_vm15 = vmpackc.low %vm469_vm8, %vm466_vm7  ;;  %vm471_vm6 = vcmp.eq.s32.totalorder %v358_v16, %v3577_v14  ;;  %vm474_vm7 = vcmp.eq.s32.totalorder %v359_v17, %v3577_v14  ;;  %v3616_v25 = vrot.slane %v386_v18, %v393_v4  ;;  %v368_v47 = vadd.s32 112, %v3559_v2  ;;  %v631_v4 = vld [vmem:[%s5381_s2 + $0x20] sm:$0xff]  ;;  %v638_v15 = vld [vmem:[%s5381_s2 + $0x58] sm:$0xff]  ;;  %s3348_s23 = scalar_lea.vmem %s3347_s18, 96  ;;  %p3349_p2 = scmp.lt.s32.totalorder %s5339_s25, %s3347_s18 }
  0x47   : > { %2908 = vmatprep.subr.msk.bf16.mxu0 %vm2907_vm15, %v3415_v19  ;;  %vm3601_vm2 = vmpackc.low %vm470_vm11, %vm467_vm10  ;;  %vm478_vm9 = vcmp.eq.s32.totalorder %v360_v20, %v394_v12  ;;  %vm481_vm10 = vcmp.eq.s32.totalorder %v361_v21, %v394_v12  ;;  %v3621_v27 = vrot.slane %v386_v18, %v397_v5  ;;  %vm479_vm12 = vcmp.eq.s32.totalorder %v360_v20, %v3573_v13  ;;  %v608_v5 = vld [vmem:[#allocation3 + $0x28] sm:$0xff]  ;;  %v635_v12 = vld [vmem:[%s5381_s2 + $0x40] sm:$0xff]  ;;  %p3344_p10 = pnand %p3343_p6, %p5791_p9  ;;  %p3350_p3 = scmp.lt.s32.totalorder %s3348_s23, %s3342_s17 }
  0x48   : > { %2940 = vmatprep.subr.msk.bf16.mxu1 %vm3601_vm2, %v3415_v19  ;;  %vm2909_vm5 = vmpackc.low %vm468_vm14, %vm465_vm13  ;;  %vm482_vm13 = vcmp.eq.s32.totalorder %v361_v21, %v3573_v13  ;;  %vm477_vm15 = vcmp.eq.s32.totalorder %v360_v20, %v3577_v14  ;;  %v3655_v31 = vrot.slane %v386_v18, %v389_v6  ;;  %v369_v48 = vadd.s32 120, %v3559_v2  ;;  %663 = vperm.xlu0 %3312, %v629_v42   ;;  %v609_v6 = vld [vmem:[#allocation3 + $0x30] sm:$0xff]  ;;  %v612_v13 = vld [vmem:[#allocation3 + $0x48] sm:$0xff] }
  0x49   : > { %vm2911_vm8 = vmpackc.low %vm475_vm1, %vm472_vm0  ;;  %vm480_vm0 = vcmp.eq.s32.totalorder %v361_v21, %v3577_v14  ;;  %728 = vperm.xlu1 %3313, %v642_v44   ;;  %v3853_v14 = vld [vmem:[#allocation3 + $0x50] sm:$0xff]  ;;  %v3863_v17 = vld [vmem:[#allocation3 + $0x58] sm:$0xff]  ;;  %p3345_p12 = pneg %p3344_p10  ;;  %p3351_p4 = por %p3350_p3, %p3349_p2 }
  0x4a   : > { %2910 = vmatpush1.bf16.msk.msra.mxu0 %vm2909_vm5, %v3415_v19  ;;  %2942 = vmatpush3.bf16.msk.msra.mxu1 %vm3601_vm2, %v3415_v19  ;;  %vm3634_vm11 = vmpackc.low %vm476_vm4, %vm473_vm3  ;;  %vm484_vm2 = vcmp.eq.s32.totalorder %v362_v23, %v3616_v25  ;;  %vm487_vm3 = vcmp.eq.s32.totalorder %v363_v24, %v3616_v25  ;;  %vm485_vm5 = vcmp.eq.s32.totalorder %v362_v23, %v3621_v27  ;;  %v637_v16 = vld [vmem:[%s5381_s2 + $0x50] sm:$0xff]  ;;  %v3865_v18 = vld [vmem:[#allocation3 + $0x60] sm:$0xff] }
  0x4b   : > { %2912 = vmatprep.subr.msk.bf16.mxu0 %vm2911_vm8, %v3415_v19  ;;  %2944 = vmatprep.subr.msk.bf16.mxu1 %vm3634_vm11, %v3415_v19  ;;  %vm2913_vm14 = vmpackc.low %vm474_vm7, %vm471_vm6  ;;  %vm488_vm6 = vcmp.eq.s32.totalorder %v363_v24, %v3621_v27  ;;  %v1305_v20 = vld [vmem:[%s5383_s4] sm:$0xff]  ;;  %v3876_v21 = vld [vmem:[#allocation3 + $0x68] sm:$0xff]  ;;  %p3352_p7 = pnand %p3351_p4, %p3345_p12 }
  0x4c   : > { %vm2915_vm1 = vmpackc.low %vm481_vm10, %vm478_vm9  ;;  %vm483_vm9 = vcmp.eq.s32.totalorder %v362_v23, %v3655_v31  ;;  %vm486_vm10 = vcmp.eq.s32.totalorder %v363_v24, %v3655_v31  ;;  %723 = vperm.xlu0 %3312, %v641_v49   ;;  %v3878_v22 = vld [vmem:[#allocation3 + $0x70] sm:$0xff]  ;;  %v1308_v23 = vld [vmem:[%s5383_s4 + $0x18] sm:$0xff] }
  0x4d   : > { %vm3665_vm4 = vmpackc.low %vm482_vm13, %vm479_vm12  ;;  %vm490_vm12 = vcmp.eq.s32.totalorder %v364_v32, %v3616_v25  ;;  %vm493_vm13 = vcmp.eq.s32.totalorder %v365_v33, %v3616_v25  ;;  %738 = vperm.xlu1 %3313, %v644_v50   ;;  %v1307_v24 = vld [vmem:[%s5383_s4 + $0x10] sm:$0xff]  ;;  %v619_v26 = vld [vmem:[#allocation3 + $0x80] sm:$0xff] }
  0x4e   : > { %2914 = vmatpush1.bf16.msk.msra.mxu0 %vm2913_vm14, %v3415_v19  ;;  %2946 = vmatpush3.bf16.msk.msra.mxu1 %vm3634_vm11, %v3415_v19  ;;  %vm3682_vm7 = vmpackc.low %vm480_vm0, %vm477_vm15  ;;  %vm491_vm14 = vcmp.eq.s32.totalorder %v364_v32, %v3621_v27  ;;  %vm494_vm15 = vcmp.eq.s32.totalorder %v365_v33, %v3621_v27  ;;  %v1309_v28 = vld [vmem:[%s5383_s4 + $0x20] sm:$0xff]  ;;  %v620_v29 = vld [vmem:[#allocation3 + $0x88] sm:$0xff] }
  0x4f   : > { %2916 = vmatprep.subr.msk.bf16.mxu0 %vm2915_vm1, %v3415_v19  ;;  %2948 = vmatprep.subr.msk.bf16.mxu1 %vm3665_vm4, %v3415_v19  ;;  %vm3697_vm8 = vmpackc.low %vm487_vm3, %vm484_vm2  ;;  %vm489_vm2 = vcmp.eq.s32.totalorder %v364_v32, %v3655_v31  ;;  %vm492_vm3 = vcmp.eq.s32.totalorder %v365_v33, %v3655_v31  ;;  %v621_v30 = vld [vmem:[#allocation3 + $0x90] sm:$0xff]  ;;  %v622_v33 = vld [vmem:[#allocation3 + $0x98] sm:$0xff] }
  0x50   : > { %vm3703_vm11 = vmpackc.low %vm488_vm6, %vm485_vm5  ;;  %vm496_vm5 = vcmp.eq.s32.totalorder %v366_v40, %v3616_v25  ;;  %vm499_vm6 = vcmp.eq.s32.totalorder %v367_v41, %v3616_v25  ;;  %733 = vperm.xlu0 %3312, %v643_v52   ;;  %v1311_v32 = vld [vmem:[%s5383_s4 + $0x30] sm:$0xff]  ;;  %v623_v34 = vld [vmem:[#allocation3 + $0xa0] sm:$0xff] }
  0x51   : > { %vm3722_vm0 = vmpackc.low %vm486_vm10, %vm483_vm9  ;;  %748 = vperm.xlu1 %3313, %v646_v53   ;;  %v1895_v35 = vld [vmem:[%s5385_s6 + $0x8] sm:$0xff]  ;;  %v1894_v36 = vld [vmem:[%s5385_s6] sm:$0xff] }
  0x52   : > { %2918 = vmatpush1.bf16.msk.msra.mxu0 %vm3682_vm7, %v3415_v19  ;;  %2950 = vmatpush3.bf16.msk.msra.mxu1 %vm3665_vm4, %v3415_v19  ;;  %vm3737_vm1 = vmpackc.low %vm493_vm13, %vm490_vm12  ;;  %vm497_vm7 = vcmp.eq.s32.totalorder %v366_v40, %v3621_v27  ;;  %vm495_vm12 = vcmp.eq.s32.totalorder %v366_v40, %v3655_v31  ;;  %v624_v37 = vld [vmem:[#allocation3 + $0xa8] sm:$0xff]  ;;  %v625_v38 = vld [vmem:[#allocation3 + $0xb0] sm:$0xff] }
  0x53   : > { %2920 = vmatprep.subr.msk.bf16.mxu0 %vm3697_vm8, %v3415_v19  ;;  %2952 = vmatprep.subr.msk.bf16.mxu1 %vm3703_vm11, %v3415_v19  ;;  %vm3743_vm4 = vmpackc.low %vm494_vm15, %vm491_vm14  ;;  %vm500_vm8 = vcmp.eq.s32.totalorder %v367_v41, %v3621_v27  ;;  %vm502_vm14 = vcmp.eq.s32.totalorder %v368_v47, %v3616_v25  ;;  %vm505_vm15 = vcmp.eq.s32.totalorder %v369_v48, %v3616_v25  ;;  %v618_v25 = vld [vmem:[#allocation3 + $0x78] sm:$0xff]  ;;  %v1896_v40 = vld [vmem:[%s5385_s6 + $0x10] sm:$0xff] }
  0x54   : > { %vm2925_vm9 = vmpackc.low %vm492_vm3, %vm489_vm2  ;;  %743 = vperm.xlu0 %3312, %v645_v55   ;;  %v1897_v39 = vld [vmem:[%s5385_s6 + $0x18] sm:$0xff]  ;;  %v1899_v42 = vld [vmem:[%s5385_s6 + $0x28] sm:$0xff] }
  0x55   : > { %vm2927_vm10 = vmpackc.low %vm499_vm6, %vm496_vm5  ;;  %vm501_vm6 = vcmp.eq.s32.totalorder %v368_v47, %v3655_v31  ;;  %758 = vperm.xlu1 %3313, %v648_v56   ;;  %v1898_v43 = vld [vmem:[%s5385_s6 + $0x20] sm:$0xff]  ;;  %v1901_v44 = vld [vmem:[%s5385_s6 + $0x38] sm:$0xff] }
  0x56   : > { %2922 = vmatpush1.bf16.msk.msra.mxu0 %vm3722_vm0, %v3415_v19  ;;  %2954 = vmatpush3.bf16.msk.msra.mxu1 %vm3703_vm11, %v3415_v19  ;;  %vm498_vm11 = vcmp.eq.s32.totalorder %v367_v41, %v3655_v31  ;;  %vm3775_vm13 = vmpackc.low %vm500_vm8, %vm497_vm7  ;;  %vm503_vm0 = vcmp.eq.s32.totalorder %v368_v47, %v3621_v27  ;;  %v626_v41 = vld [vmem:[#allocation3 + $0xb8] sm:$0xff]  ;;  %v1900_v45 = vld [vmem:[%s5385_s6 + $0x30] sm:$0xff]  ;;  %vm1353_vm8 = vcmask 785408  }
  0x57   : > { %2924 = vmatprep.subr.msk.bf16.mxu0 %vm3737_vm1, %v3415_v19  ;;  %2956 = vmatprep.subr.msk.bf16.mxu1 %vm3743_vm4, %v3415_v19  ;;  %vm506_vm1 = vcmp.eq.s32.totalorder %v369_v48, %v3621_v27  ;;  %vm2929_vm2 = vmpackc.low %vm498_vm11, %vm495_vm12  ;;  %v1310_v27 = vld [vmem:[%s5383_s4 + $0x28] sm:$0xff] }
  0x58   : > { %vm2931_vm3 = vmpackc.low %vm505_vm15, %vm502_vm14  ;;  %753 = vperm.xlu0 %3312, %v647_v57   ;;  %v1274_v46 = vld [vmem:[%s5382_s3 + $0x8] sm:$0xff] }
  0x59   : > { %vm3797_vm5 = vmpackc.low %vm506_vm1, %vm503_vm0  ;;  %768 = vperm.xlu1 %3313, %v650_v60  }
  0x5a   : > { %2926 = vmatpush1.bf16.msk.msra.mxu0 %vm2925_vm9, %v3415_v19  ;;  %2958 = vmatpush3.bf16.msk.msra.mxu1 %vm3743_vm4, %v3415_v19  ;;  %vm504_vm4 = vcmp.eq.s32.totalorder %v369_v48, %v3655_v31  ;;  %v1312_v31 = vld [vmem:[%s5383_s4 + $0x38] sm:$0xff]  ;;  %vm1942_vm9 = vcmask 523264  }
  0x5b   : > { %2928 = vmatprep.subr.msk.bf16.mxu0 %vm2927_vm10, %v3415_v19  ;;  %2960 = vmatprep.subr.msk.bf16.mxu1 %vm3775_vm13, %v3415_v19  ;;  %vm2933_vm7 = vmpackc.low %vm504_vm4, %vm501_vm6 }
  0x5c   : > { %763 = vperm.xlu0 %3312, %v649_v61  }
  0x5d   : > { %678 = vperm.xlu1 %3313, %v632_v3  }
  0x5e   : > { %2930 = vmatpush1.bf16.msk.msra.mxu0 %vm2929_vm2, %v3415_v19  ;;  %2962 = vmatpush3.bf16.msk.msra.mxu1 %vm3775_vm13, %v3415_v19 }
  0x5f   : > { %2932 = vmatprep.subr.msk.bf16.mxu0 %vm2931_vm3, %v3415_v19  ;;  %2964 = vmatprep.subr.msk.bf16.mxu1 %vm3797_vm5, %v3415_v19 }
  0x60   : > { %673 = vperm.xlu0 %3312, %v631_v4  }
  0x61   : > { %688 = vperm.xlu1 %3313, %v634_v7  }
  0x62   : > { %2934 = vmatpush1.bf16.msk.msra.mxu0 %vm2933_vm7, %v3415_v19  ;;  %2966 = vmatpush3.bf16.msk.msra.mxu1 %vm3797_vm5, %v3415_v19  ;;  %v1306_v19 = vld [vmem:[%s5383_s4 + $0x8] sm:$0xff] }
  0x65   : > { %836 = vmatmul.mubr.f32.vlgmr.msra.gmra.mrb[0].mxu0 %v3568_v8  ;;  %2821 = vmatmul.mubr.f32.vlgmr.msra.gmra.mrb[0].mxu1 %v604_v58  ;;  %v633_v8 = vld [vmem:[%s5381_s2 + $0x30] sm:$0xff] }
  0x66   : > { %841 = vmatprep.mubr.f32.mxu0 %v5393_v1  ;;  %2823 = vmatprep.mubr.f32.mxu1 %v605_v59 }
  0x67   : > { %683 = vperm.xlu0 %3312, %v633_v8   ;;  %698 = vperm.xlu1 %3313, %v636_v11  }
  0x69   : > { %842 = vmatmul.mubr.f32.gmra.mrb[2].mxu0 %v604_v58  ;;  %2824 = vmatmul.mubr.f32.gmra.mrb[2].mxu1 %v606_v62 }
  0x6a   : > { %847 = vmatprep.mubr.f32.mxu0 %v5393_v1  ;;  %2826 = vmatprep.mubr.f32.mxu1 %v607_v63 }
  0x6b   : > { %693 = vperm.xlu0 %3312, %v635_v12   ;;  %708 = vperm.xlu1 %3313, %v638_v15  }
  0x6d   : > { %848 = vmatmul.mubr.f32.gmra.mrb[4].mxu0 %v605_v59  ;;  %2827 = vmatmul.mubr.f32.gmra.mrb[4].mxu1 %v608_v5 }
  0x6e   : > { %853 = vmatprep.mubr.f32.mxu0 %v5393_v1  ;;  %2829 = vmatprep.mubr.f32.mxu1 %v609_v6 }
  0x6f   : > { %703 = vperm.xlu0 %3312, %v637_v16   ;;  %1320 = vperm.xlu1 %3313, %v1306_v19  }
  0x71   : > { %854 = vmatmul.mubr.f32.gmra.mrb[6].mxu0 %v606_v62  ;;  %2830 = vmatmul.mubr.f32.gmra.mrb[6].mxu1 %v610_v9 }
  0x72   : > { %859 = vmatprep.mubr.f32.mxu0 %v5393_v1  ;;  %2832 = vmatprep.mubr.f32.mxu1 %v611_v10 }
  0x73   : > { %1315 = vperm.xlu0 %3312, %v1305_v20   ;;  %1330 = vperm.xlu1 %3313, %v1308_v23  }
  0x75   : > { %860 = vmatmul.mubr.f32.gmra.mrb[8].mxu0 %v607_v63  ;;  %2833 = vmatmul.mubr.f32.gmra.mrb[8].mxu1 %v612_v13 }
  0x76   : > { %865 = vmatprep.mubr.f32.mxu0 %v5393_v1  ;;  %2835 = vmatprep.mubr.f32.mxu1 %v3853_v14 }
  0x77   : > { %1325 = vperm.xlu0 %3312, %v1307_v24   ;;  %1340 = vperm.xlu1 %3313, %v1310_v27  }
  0x79   : > { %866 = vmatmul.mubr.f32.gmra.mrb[10].mxu0 %v608_v5  ;;  %2836 = vmatmul.mubr.f32.gmra.mrb[10].mxu1 %v3863_v17 }
  0x7a   : > { %871 = vmatprep.mubr.f32.mxu0 %v5393_v1  ;;  %2838 = vmatprep.mubr.f32.mxu1 %v3865_v18 }
  0x7b   : > { %1335 = vperm.xlu0 %3312, %v1309_v28   ;;  %1350 = vperm.xlu1 %3313, %v1312_v31  }
  0x7d   : > { %872 = vmatmul.mubr.f32.gmra.mrb[12].mxu0 %v609_v6  ;;  %2839 = vmatmul.mubr.f32.gmra.mrb[12].mxu1 %v3876_v21 }
  0x7e   : > { %877 = vmatprep.mubr.f32.mxu0 %v5393_v1  ;;  %2841 = vmatprep.mubr.f32.mxu1 %v3878_v22 }
  0x7f   : > { %1345 = vperm.xlu0 %3312, %v1311_v32   ;;  %1909 = vperm.xlu1 %3313, %v1895_v35  }
  0x81   : > { %878 = vmatmul.mubr.f32.gmra.mrb[14].mxu0 %v610_v9  ;;  %2842 = vmatmul.mubr.f32.gmra.mrb[14].mxu1 %v618_v25 }
  0x82   : > { %883 = vmatprep.mubr.f32.mxu0 %v5393_v1  ;;  %2844 = vmatprep.mubr.f32.mxu1 %v619_v26 }
  0x83   : > { %1904 = vperm.xlu0 %3312, %v1894_v36   ;;  %1919 = vperm.xlu1 %3313, %v1897_v39  }
  0x85   : > { %884 = vmatmul.mubr.f32.gmra.mrb[16].mxu0 %v611_v10  ;;  %2845 = vmatmul.mubr.f32.gmra.mrb[16].mxu1 %v620_v29 }
  0x86   : > { %889 = vmatprep.mubr.f32.mxu0 %v5393_v1  ;;  %2847 = vmatprep.mubr.f32.mxu1 %v621_v30 }
  0x87   : > { %1914 = vperm.xlu0 %3312, %v1896_v40   ;;  %1929 = vperm.xlu1 %3313, %v1899_v42  }
  0x89   : > { %890 = vmatmul.mubr.f32.gmra.mrb[18].mxu0 %v612_v13  ;;  %2848 = vmatmul.mubr.f32.gmra.mrb[18].mxu1 %v622_v33 }
  0x8a   : > { %895 = vmatprep.mubr.f32.mxu0 %v5393_v1  ;;  %2850 = vmatprep.mubr.f32.mxu1 %v623_v34 }
  0x8b   : > { %1924 = vperm.xlu0 %3312, %v1898_v43   ;;  %1939 = vperm.xlu1 %3313, %v1901_v44  }
  0x8d   : > { %896 = vmatmul.mubr.f32.gmra.mrb[20].mxu0 %v3853_v14  ;;  %2851 = vmatmul.mubr.f32.gmra.mrb[20].mxu1 %v624_v37 }
  0x8e   : > { %901 = vmatprep.mubr.f32.mxu0 %v5393_v1  ;;  %2853 = vmatprep.mubr.f32.mxu1 %v625_v38 }
  0x8f   : > { %1934 = vperm.xlu0 %3312, %v1900_v45  }
  0x91   : > { %902 = vmatmul.mubr.f32.gmra.mrb[22].mxu0 %v3863_v17  ;;  %2854 = vmatmul.mubr.f32.gmra.mrb[22].mxu1 %v626_v41 }
  0x92   : > { %907 = vmatprep.mubr.f32.mxu0 %v5393_v1  ;;  %1442 = vmatprep.mubr.f32.mxu1 %v1274_v46 }
  0x95   : > { %908 = vmatmul.mubr.f32.gmra.mrb[24].mxu0 %v3865_v18 }
  0x96   : > { %913 = vmatprep.mubr.f32.mxu0 %v5393_v1 }
  0x99   : > { %914 = vmatmul.mubr.f32.gmra.mrb[26].mxu0 %v3876_v21 }
  0x9a   : > { %919 = vmatprep.mubr.f32.mxu0 %v5393_v1 }
  0x9d   : > { %920 = vmatmul.mubr.f32.gmra.mrb[28].mxu0 %v3878_v22 }
  0x9e   : > { %925 = vmatprep.mubr.f32.mxu0 %v5393_v1 }
  0xa1   : > { %926 = vmatmul.mubr.f32.gmra.mrb[30].mxu0 %v618_v25 }
  0xa2   : > { %931 = vmatprep.mubr.f32.mxu0 %v5393_v1 }
  0xa5   : > { %932 = vmatmul.mubr.f32.gmra.mrb[32].mxu0 %v619_v26 }
  0xa6   : > { %937 = vmatprep.mubr.f32.mxu0 %v5393_v1 }
  0xa9   : > { %938 = vmatmul.mubr.f32.gmra.mrb[34].mxu0 %v620_v29 }
  0xaa   : > { %943 = vmatprep.mubr.f32.mxu0 %v5393_v1 }
  0xad   : > { %944 = vmatmul.mubr.f32.gmra.mrb[36].mxu0 %v621_v30 }
  0xae   : > { %949 = vmatprep.mubr.f32.mxu0 %v5393_v1 }
  0xb1   : > { %950 = vmatmul.mubr.f32.gmra.mrb[38].mxu0 %v622_v33 }
  0xb2   : > { %955 = vmatprep.mubr.f32.mxu0 %v5393_v1 }
  0xb5   : > { %956 = vmatmul.mubr.f32.gmra.mrb[40].mxu0 %v623_v34 }
  0xb6   : > { %961 = vmatprep.mubr.f32.mxu0 %v5393_v1 }
  0xb9   : > { %962 = vmatmul.mubr.f32.gmra.mrb[42].mxu0 %v624_v37 }
  0xba   : > { %967 = vmatprep.mubr.f32.mxu0 %v5393_v1  ;;  %v3949_v47 = vpop.permute.xlu1 %713  ;;  %v3951_v48 = vpop.permute.xlu0 %653 }
  0xbd   : > { %968 = vmatmul.mubr.f32.gmra.mrb[44].mxu0 %v625_v38 }
  0xbe   : > { %973 = vmatprep.mubr.f32.mxu0 %v5393_v1  ;;  %v3953_v49 = vpop.permute.xlu1 %718  ;;  %v3955_v50 = vpop.permute.xlu0 %658 }
  0xc1   : > { %974 = vmatmul.mubr.f32.gmra.mrb[46].mxu0 %v626_v41 }
  0xc2   : > { %1668 = vmatprep.mubr.f32.mxu0 %v1274_v46  ;;  %v3957_v51 = vpop.permute.xlu1 %668 }
  0xc3   : > { %5532 = vst [vmem:[#allocation10_spill] sm:$0xff] %v3957_v51 }
  0xc7   : > { %v3959_v52 = vpop.permute.xlu0 %663 }
  0xc8   : > { %v3961_v53 = vpop.permute.xlu1 %728 }
  0xc9   : > { %5533 = vst [vmem:[#allocation11_spill] sm:$0xff] %v3961_v53 }
  0xcb   : > { %v3963_v54 = vpop.permute.xlu0 %723 }
  0xcc   : > { %v3965_v55 = vpop.permute.xlu1 %738 }
  0xcd   : > { %5534 = vst [vmem:[#allocation12_spill] sm:$0xff] %v3965_v55 }
  0xcf   : > { %v3967_v56 = vpop.permute.xlu0 %733 }
  0xd0   : > { %5535 = vst [vmem:[#allocation13_spill] sm:$0xff] %v3967_v56  ;;  %v3969_v57 = vpop.permute.xlu1 %748 }
  0xd1   : > { %5536 = vst [vmem:[#allocation14_spill] sm:$0xff] %v3969_v57 }
  0xd3   : > { %v3971_v58 = vpop.permute.xlu0 %743 }
  0xd4   : > { %5537 = vst [vmem:[#allocation15_spill] sm:$0xff] %v3971_v58  ;;  %v3973_v59 = vpop.permute.xlu1 %758 }
  0xd7   : > { %v3975_v60 = vpop.permute.xlu0 %753 }
  0xd8   : > { %v3977_v61 = vpop.permute.xlu1 %768 }
  0xd9   : > { %5538 = vst [vmem:[#allocation16_spill] sm:$0xff] %v3977_v61 }
  0xdb   : > { %v3979_v62 = vpop.permute.xlu0 %763 }
  0xdc   : > { %v679_v63 = vpop.permute.xlu1 %678 }
  0xdf   : > { %v674_v3 = vpop.permute.xlu0 %673 }
  0xe0   : > { %v3991_v10 = vpop.permute.xlu1 %688 }
  0xe6   : > { %v3993_v11 = vpop.permute.xlu0 %683  ;;  %v4017_v26 = vpop.permute.xlu1 %698 }
  0xea   : > { %v4019_v27 = vpop.permute.xlu0 %693  ;;  %v4041_v42 = vpop.permute.xlu1 %708 }
  0xee   : > { %v4043_v43 = vpop.permute.xlu0 %703 }
 0x138   : > { %v3981_v4 = vpop.f32.mrb[0].mxu0  ;;  %v2822_v5 = vpop.f32.mrb[0].mxu1 }
 0x139   : > { %v3983_v6 = vpop.f32.mrb[1].mxu0  ;;  %v1046_v7 = vpop.f32.mrb[1].mxu1  ;;  %v3986_v8 = vadd.f32 %v2822_v5, %v3955_v50 }
 0x13a   : > { %v3989_v9 = vadd.f32 %v1046_v7, %v3951_v48 }
 0x13c   : > { %v3995_v12 = vpop.f32.mrb[2].mxu0  ;;  %v2825_v13 = vpop.f32.mrb[2].mxu1 }
 0x13d   : > { %v3999_v15 = vpop.f32.mrb[3].mxu0  ;;  %v1056_v16 = vpop.f32.mrb[3].mxu1  ;;  %v4002_v17 = vadd.f32 %v2825_v13, %v3957_v51 }
 0x13e   : > { %v4005_v18 = vadd.f32 %v1056_v16, %v3959_v52 }
 0x140   : > { %v4007_v19 = vpop.f32.mrb[4].mxu0  ;;  %v2828_v20 = vpop.f32.mrb[4].mxu1 }
 0x141   : > { %5539 = vst [vmem:[#allocation17_spill] sm:$0xff] %v4007_v19  ;;  %v4011_v22 = vpop.f32.mrb[5].mxu0  ;;  %v1066_v23 = vpop.f32.mrb[5].mxu1  ;;  %v4013_v24 = vadd.f32 %v2828_v20, %v679_v63 }
 0x142   : > { %5540 = vst [vmem:[#allocation18_spill] sm:$0xff] %v4011_v22  ;;  %v4015_v25 = vadd.f32 %v1066_v23, %v674_v3 }
 0x144   : > { %5541 = vst [vmem:[#allocation19_spill] sm:$0xff] %v4015_v25  ;;  %v4021_v28 = vpop.f32.mrb[6].mxu0  ;;  %v2831_v29 = vpop.f32.mrb[6].mxu1 }
 0x145   : > { %5542 = vst [vmem:[#allocation20_spill] sm:$0xff] %v4021_v28  ;;  %v4025_v31 = vpop.f32.mrb[7].mxu0  ;;  %v1076_v32 = vpop.f32.mrb[7].mxu1  ;;  %v4028_v33 = vadd.f32 %v2831_v29, %v3991_v10 }
 0x146   : > { %5543 = vst [vmem:[#allocation21_spill] sm:$0xff] %v4025_v31  ;;  %v4031_v34 = vadd.f32 %v1076_v32, %v3993_v11 }
 0x147   : > { %5544 = vst [vmem:[#allocation22_spill] sm:$0xff] %v4028_v33 }
 0x148   : > { %5545 = vst [vmem:[#allocation23_spill] sm:$0xff] %v4031_v34  ;;  %v861_v35 = vpop.f32.mrb[8].mxu0  ;;  %v2834_v36 = vpop.f32.mrb[8].mxu1 }
 0x149   : > { %v863_v38 = vpop.f32.mrb[9].mxu0  ;;  %v1086_v39 = vpop.f32.mrb[9].mxu1  ;;  %v4036_v40 = vadd.f32 %v2834_v36, %v4017_v26  ;;  %v4047_v5 = vadd.f32 %v861_v35, %v674_v3 }
 0x14a   : > { %v4039_v41 = vadd.f32 %v1086_v39, %v4019_v27  ;;  %v4051_v20 = vadd.f32 %v863_v38, %v674_v3 }
 0x14b   : > { %5546 = vst [vmem:[#allocation24_spill] sm:$0xff] %v4036_v40  ;;  %5548 = vst [vmem:[#allocation26_spill] sm:$0xff] %v4047_v5 }
 0x14c   : > { %5547 = vst [vmem:[#allocation25_spill] sm:$0xff] %v4039_v41  ;;  %v867_v44 = vpop.f32.mrb[10].mxu0  ;;  %v2837_v45 = vpop.f32.mrb[10].mxu1 }
 0x14d   : > { %v4049_v7 = vadd.f32 %v867_v44, %v679_v63  ;;  %v869_v13 = vpop.f32.mrb[11].mxu0  ;;  %v1096_v16 = vpop.f32.mrb[11].mxu1  ;;  %v4056_v29 = vadd.f32 %v2837_v45, %v4041_v42 }
 0x14e   : > { %v4053_v23 = vadd.f32 %v869_v13, %v679_v63  ;;  %v4059_v32 = vadd.f32 %v1096_v16, %v4043_v43 }
 0x14f   : > { %5549 = vst [vmem:[#allocation27_spill] sm:$0xff] %v4049_v7  ;;  %5550 = vst [vmem:[#allocation28_spill] sm:$0xff] %v4056_v29 }
 0x150   : > { %5551 = vst [vmem:[#allocation29_spill] sm:$0xff] %v4059_v32  ;;  %v873_v39 = vpop.f32.mrb[12].mxu0  ;;  %v2840_v35 = vpop.f32.mrb[12].mxu1 }
 0x151   : > { %v875_v38 = vpop.f32.mrb[13].mxu0  ;;  %v4068_v63 = vadd.f32 %v2840_v35, %v3953_v49  ;;  %v1106_v45 = vpop.f32.mrb[13].mxu1  ;;  %v4100_v37 = vadd.f32 %v873_v39, %v3993_v11 }
 0x152   : > { %v4071_v13 = vadd.f32 %v1106_v45, %v3949_v47  ;;  %v4103_v30 = vadd.f32 %v875_v38, %v3993_v11 }
 0x153   : > { %5552 = vst [vmem:[#allocation30_spill] sm:$0xff] %v4068_v63  ;;  %v4075_v16 = vmul.f32 %v4068_v63, %v3986_v8  ;;  %v4079_v0 = vmul.f32 %v4068_v63, %v4013_v24  ;;  %v4083_v1 = vmul.f32 %v4068_v63, %v4036_v40  ;;  %5556 = vst [vmem:[#allocation34_spill] sm:$0xff] %v4100_v37 }
 0x154   : > { %5553 = vst [vmem:[#allocation31_spill] sm:$0xff] %v4071_v13  ;;  %v879_v36 = vpop.f32.mrb[14].mxu0  ;;  %v4087_v35 = vmul.f32 %v4071_v13, %v3989_v9  ;;  %v4091_v45 = vmul.f32 %v4071_v13, %v4015_v25  ;;  %v2843_v3 = vpop.f32.mrb[14].mxu1  ;;  %v4095_v44 = vmul.f32 %v4071_v13, %v4039_v41  ;;  %5557 = vst [vmem:[#allocation35_spill] sm:$0xff] %v4103_v30 }
 0x155   : > { %5554 = vst [vmem:[#allocation32_spill] sm:$0xff] %v4079_v0  ;;  %v4106_v21 = vadd.f32 %v879_v36, %v3991_v10  ;;  %v881_v14 = vpop.f32.mrb[15].mxu0  ;;  %v4109_v2 = vadd.f32 %v2843_v3, %v3961_v53  ;;  %v1116_v31 = vpop.f32.mrb[15].mxu1 }
 0x156   : > { %5555 = vst [vmem:[#allocation33_spill] sm:$0xff] %v4091_v45  ;;  %v4112_v28 = vadd.f32 %v881_v14, %v3991_v10  ;;  %v4115_v51 = vadd.f32 %v1116_v31, %v3963_v54  ;;  %v3089_v39 = vpack.c.bf16 %v4075_v16, %v4087_v35 }
 0x157   : > { %5558 = vst [vmem:[#allocation36_spill] sm:$0xff] %v4106_v21  ;;  %5559 = vst [vmem:[#allocation37_spill] sm:$0xff] %v4109_v2  ;;  %v4123_v36 = vmul.f32 %v4109_v2, %v4002_v17  ;;  %v4127_v3 = vmul.f32 %v4109_v2, %v4028_v33  ;;  %v4131_v10 = vmul.f32 %v4109_v2, %v4056_v29 }
 0x158   : > { %5560 = vst [vmem:[#allocation38_spill] sm:$0xff] %v4112_v28  ;;  %5561 = vst [vmem:[#allocation39_spill] sm:$0xff] %v4115_v51  ;;  %v4137_v31 = vmul.f32 %v4115_v51, %v4005_v18  ;;  %v4141_v38 = vmul.f32 %v4115_v51, %v4031_v34  ;;  %v885_v16 = vpop.f32.mrb[16].mxu0  ;;  %v2846_v35 = vpop.f32.mrb[16].mxu1  ;;  %v4145_v46 = vmul.f32 %v4115_v51, %v4059_v32 }
 0x159   : > { %5562 = vst [vmem:[#allocation40_spill] sm:$0xff] %v4127_v3  ;;  %v4150_v13 = vadd.f32 %v2846_v35, %v3965_v55  ;;  %v887_v14 = vpop.f32.mrb[17].mxu0  ;;  %v1126_v63 = vpop.f32.mrb[17].mxu1 }
 0x15a   : > { %5563 = vst [vmem:[#allocation41_spill] sm:$0xff] %v4141_v38  ;;  %v4157_v53 = vadd.f32 %v1126_v63, %v3967_v56  ;;  %v3093_v22 = vpack.c.bf16 %v4123_v36, %v4137_v31  ;;  %v4188_v56 = vadd.f32 %v885_v16, %v4019_v27  ;;  %v4191_v63 = vadd.f32 %v887_v14, %v4019_v27 }
 0x15b   : > { %5564 = vst [vmem:[#allocation42_spill] sm:$0xff] %v4150_v13  ;;  %v4165_v35 = vmul.f32 %v4150_v13, %v3986_v8  ;;  %v1218_v51 = vmul.f32 %v4150_v13, %v4013_v24  ;;  %v4171_v45 = vmul.f32 %v4150_v13, %v4036_v40 }
 0x15c   : > { %5565 = vst [vmem:[#allocation43_spill] sm:$0xff] %v4157_v53  ;;  %v4177_v36 = vmul.f32 %v4157_v53, %v3989_v9  ;;  %v891_v31 = vpop.f32.mrb[18].mxu0  ;;  %v2849_v0 = vpop.f32.mrb[18].mxu1  ;;  %v1215_v11 = vmul.f32 %v4157_v53, %v4015_v25  ;;  %v4183_v2 = vmul.f32 %v4157_v53, %v4039_v41  ;;  %5567 = vst [vmem:[#allocation45_spill] sm:$0xff] %v4188_v56 }
 0x15d   : > { %5568 = vst [vmem:[#allocation46_spill] sm:$0xff] %v4191_v63  ;;  %v4194_v38 = vadd.f32 %v891_v31, %v4017_v26  ;;  %v4197_v3 = vadd.f32 %v2849_v0, %v3969_v57  ;;  %v893_v28 = vpop.f32.mrb[19].mxu0  ;;  %v1136_v21 = vpop.f32.mrb[19].mxu1 }
 0x15e   : > { %5566 = vst [vmem:[#allocation44_spill] sm:$0xff] %v4183_v2  ;;  %v4200_v30 = vadd.f32 %v893_v28, %v4017_v26  ;;  %v4203_v19 = vadd.f32 %v1136_v21, %v3971_v58  ;;  %v3087_v55 = vpack.c.bf16 %v1218_v51, %v1215_v11  ;;  %v3097_v16 = vpack.c.bf16 %v4165_v35, %v4177_v36 }
 0x15f   : > { %5569 = vst [vmem:[#allocation47_spill] sm:$0xff] %v4194_v38  ;;  %5570 = vst [vmem:[#allocation48_spill] sm:$0xff] %v4197_v3  ;;  %v4209_v27 = vmul.f32 %v4197_v3, %v4002_v17  ;;  %v1224_v0 = vmul.f32 %v4197_v3, %v4028_v33  ;;  %v4217_v26 = vmul.f32 %v4197_v3, %v4056_v29 }
 0x160   : > { %5571 = vst [vmem:[#allocation49_spill] sm:$0xff] %v4200_v30  ;;  %5572 = vst [vmem:[#allocation50_spill] sm:$0xff] %v4203_v19  ;;  %v4221_v51 = vmul.f32 %v4203_v19, %v4005_v18  ;;  %v897_v21 = vpop.f32.mrb[20].mxu0  ;;  %v2852_v28 = vpop.f32.mrb[20].mxu1  ;;  %3088 = vmatprep.subr.bf16.mxu0 %v3087_v55  ;;  %v1221_v11 = vmul.f32 %v4203_v19, %v4031_v34  ;;  %v4227_v35 = vmul.f32 %v4203_v19, %v4059_v32 }
 0x161   : > { %v4232_v31 = vadd.f32 %v2852_v28, %v3973_v59  ;;  %v899_v14 = vpop.f32.mrb[21].mxu0  ;;  %v1146_v53 = vpop.f32.mrb[21].mxu1  ;;  %3090 = vmatpush3.bf16.msra.mxu0 %v3089_v39  ;;  %v4268_v19 = vadd.f32 %v897_v21, %v4043_v43 }
 0x162   : > { %v4239_v57 = vadd.f32 %v1146_v53, %v3975_v60  ;;  %v3091_v58 = vpack.c.bf16 %v1224_v0, %v1221_v11  ;;  %v3101_v2 = vpack.c.bf16 %v4209_v27, %v4221_v51  ;;  %v4271_v55 = vadd.f32 %v899_v14, %v4043_v43 }
 0x163   : > { %5573 = vst [vmem:[#allocation51_spill] sm:$0xff] %v4232_v31  ;;  %v4245_v28 = vmul.f32 %v4232_v31, %v3986_v8  ;;  %v4249_v39 = vmul.f32 %v4232_v31, %v4036_v40  ;;  %v1230_v13 = vmul.f32 %v4232_v31, %v4013_v24  ;;  %5575 = vst [vmem:[#allocation53_spill] sm:$0xff] %v4268_v19 }
 0x164   : > { %5574 = vst [vmem:[#allocation52_spill] sm:$0xff] %v4239_v57  ;;  %v4257_v53 = vmul.f32 %v4239_v57, %v3989_v9  ;;  %v4261_v27 = vmul.f32 %v4239_v57, %v4039_v41  ;;  %v903_v0 = vpop.f32.mrb[22].mxu0  ;;  %v2855_v51 = vpop.f32.mrb[22].mxu1  ;;  %3092 = vmatprep.subr.bf16.mxu0 %v3091_v58  ;;  %v1227_v11 = vmul.f32 %v4239_v57, %v4015_v25  ;;  %5576 = vst [vmem:[#allocation54_spill] sm:$0xff] %v4271_v55 }
 0x165   : > { %v4274_v3 = vadd.f32 %v903_v0, %v4041_v42  ;;  %v4277_v41 = vadd.f32 %v2855_v51, %v3977_v61  ;;  %v905_v40 = vpop.f32.mrb[23].mxu0  ;;  %v1156_v58 = vpop.f32.mrb[23].mxu1  ;;  %3094 = vmatpush3.bf16.msra.mxu0 %v3093_v22  ;;  %v4335_v57 = vadd.f32 %v3981_v4, %v3951_v48 }
 0x166   : > { %v4280_v25 = vadd.f32 %v905_v40, %v4041_v42  ;;  %v4283_v36 = vadd.f32 %v1156_v58, %v3979_v62  ;;  %v3095_v21 = vpack.c.bf16 %v1230_v13, %v1227_v11  ;;  %v3105_v43 = vpack.c.bf16 %v4245_v28, %v4257_v53 }
 0x167   : > { %5577 = vst [vmem:[#allocation55_spill] sm:$0xff] %v4274_v3  ;;  %5578 = vst [vmem:[#allocation56_spill] sm:$0xff] %v4277_v41  ;;  %v4289_v14 = vmul.f32 %v4277_v41, %v4002_v17  ;;  %v4293_v0 = vmul.f32 %v4277_v41, %v4056_v29  ;;  %v1236_v22 = vmul.f32 %v4277_v41, %v4028_v33 }
 0x168   : > { %5579 = vst [vmem:[#allocation57_spill] sm:$0xff] %v4280_v25  ;;  %5580 = vst [vmem:[#allocation58_spill] sm:$0xff] %v4283_v36  ;;  %v4301_v42 = vmul.f32 %v4283_v36, %v4005_v18  ;;  %v4305_v13 = vmul.f32 %v4283_v36, %v4059_v32  ;;  %v909_v28 = vpop.f32.mrb[24].mxu0  ;;  %3096 = vmatprep.subr.bf16.mxu0 %v3095_v21  ;;  %v1233_v53 = vmul.f32 %v4283_v36, %v4031_v34  ;;  %v5455_v34 = vmov 0.0|0.0  }
 0x169   : > { %v4312_v11 = vadd.f32 %v909_v28, %v3949_v47  ;;  %v911_v58 = vpop.f32.mrb[25].mxu0  ;;  %3098 = vmatpush3.bf16.msra.mxu0 %v3097_v16  ;;  %v5589_v40 = vpack.c.bf16 %v4083_v1, %v4095_v44  ;;  %v5596_v29 = vpack.c.bf16 %v4131_v10, %v4145_v46  ;;  %v5599_v46 = vld [vmem:[#allocation18_spill] sm:$0xff] }
 0x16a   : > { %v4319_v31 = vadd.f32 %v911_v58, %v3949_v47  ;;  %v3099_v21 = vpack.c.bf16 %v1236_v22, %v1233_v53  ;;  %v3109_v32 = vpack.c.bf16 %v4289_v14, %v4301_v42  ;;  %v4339_v47 = vadd.f32 %v3983_v6, %v3951_v48 }
 0x16b   : > { %5581 = vst [vmem:[#allocation59_spill] sm:$0xff] %v4312_v11  ;;  %v4327_v28 = vmul.f32 %v4312_v11, %v4047_v5  ;;  %v4331_v16 = vmul.f32 %v4312_v11, %v4188_v56  ;;  %v4351_v53 = vadd.f32 %v3995_v12, %v3955_v50  ;;  %v4358_v48 = vadd.f32 %v3999_v15, %v3955_v50 }
 0x16c   : > { %5582 = vst [vmem:[#allocation60_spill] sm:$0xff] %v4319_v31  ;;  %v915_v14 = vpop.f32.mrb[26].mxu0  ;;  %3100 = vmatprep.subr.bf16.mxu0 %v3099_v21  ;;  %v4343_v22 = vmul.f32 %v4319_v31, %v4051_v20  ;;  %v4347_v42 = vmul.f32 %v4319_v31, %v4191_v63  ;;  %v1165_v6 = vmul.f32 %v4312_v11, %v4335_v57  ;;  %v5603_v11 = vld [vmem:[#allocation20_spill] sm:$0xff] }
 0x16d   : > { %5583 = vst [vmem:[#allocation61_spill] sm:$0xff] %v4327_v28  ;;  %5584 = vst [vmem:[#allocation62_spill] sm:$0xff] %v4331_v16  ;;  %v4354_v4 = vadd.f32 %v915_v14, %v3953_v49  ;;  %v917_v58 = vpop.f32.mrb[27].mxu0  ;;  %3102 = vmatpush3.bf16.msra.mxu0 %v3101_v2  ;;  %v1166_v12 = vmul.f32 %v4319_v31, %v4339_v47  ;;  %v5614_v28 = vld [vmem:[#allocation13_spill] sm:$0xff] }
 0x16e   : > { %5585 = vst [vmem:[#allocation63_spill] sm:$0xff] %v4343_v22  ;;  %5586 = vst [vmem:[#allocation64_spill] sm:$0xff] %v4347_v42  ;;  %v4363_v21 = vadd.f32 %v917_v58, %v3953_v49  ;;  %3104 = vmatprep.subr.bf16.mxu0 %v5589_v40 }
 0x16f   : > { %5587 = vst [vmem:[#allocation65_spill] sm:$0xff] %v4354_v4  ;;  %v1168_v2 = vmul.f32 %v4354_v4, %v4351_v53  ;;  %v4374_v50 = vmul.f32 %v4354_v4, %v4049_v7  ;;  %v4378_v15 = vmul.f32 %v4354_v4, %v4194_v38 }
 0x170   : > { %5588 = vst [vmem:[#allocation66_spill] sm:$0xff] %v4363_v21  ;;  %v921_v14 = vpop.f32.mrb[28].mxu0  ;;  %v1169_v1 = vmul.f32 %v4363_v21, %v4358_v48  ;;  %v4386_v44 = vmul.f32 %v4363_v21, %v4053_v23  ;;  %v4390_v40 = vmul.f32 %v4363_v21, %v4200_v30 }
 0x171   : > { %5590 = vst [vmem:[#allocation67_spill] sm:$0xff] %v4374_v50  ;;  %5591 = vst [vmem:[#allocation68_spill] sm:$0xff] %v4378_v15  ;;  %v4395_v51 = vadd.f32 %v921_v14, %v3963_v54  ;;  %v923_v36 = vpop.f32.mrb[29].mxu0  ;;  %3106 = vmatpush3.bf16.msra.mxu0 %v3105_v43  ;;  %v2969_v49 = vpack.c.bf16 %v1168_v2, %v1165_v6  ;;  %v5602_v43 = vld [vmem:[#allocation10_spill] sm:$0xff]  ;;  %v5608_v15 = vld [vmem:[#allocation44_spill] sm:$0xff] }
 0x172   : > { %5592 = vst [vmem:[#allocation69_spill] sm:$0xff] %v4386_v44  ;;  %5593 = vst [vmem:[#allocation70_spill] sm:$0xff] %v4390_v40  ;;  %v4402_v41 = vadd.f32 %v923_v36, %v3963_v54  ;;  %3108 = vmatprep.subr.bf16.mxu0 %v5596_v29  ;;  %v2967_v58 = vpack.c.bf16 %v1169_v1, %v1166_v12  ;;  %v5598_v54 = vld [vmem:[#allocation17_spill] sm:$0xff]  ;;  %v4425_v29 = vadd.f32 %v5599_v46, %v3959_v52  ;;  %v5600_v12 = vld [vmem:[#allocation35_spill] sm:$0xff] }
 0x173   : > { %5594 = vst [vmem:[#allocation71_spill] sm:$0xff] %v4395_v51  ;;  %v4413_v6 = vmul.f32 %v4395_v51, %v4100_v37  ;;  %v4417_v2 = vmul.f32 %v4395_v51, %v4268_v19  ;;  %v4421_v36 = vadd.f32 %v5598_v54, %v3959_v52  ;;  %v4437_v14 = vadd.f32 %v5603_v11, %v5602_v43  ;;  %v5604_v54 = vld [vmem:[#allocation11_spill] sm:$0xff]  ;;  %v5606_v52 = vld [vmem:[#allocation21_spill] sm:$0xff] }
 0x174   : > { %5595 = vst [vmem:[#allocation72_spill] sm:$0xff] %v4402_v41  ;;  %v927_v10 = vpop.f32.mrb[30].mxu0  ;;  %2968 = vmatprep.subr.bf16.mxu1 %v2967_v58  ;;  %v4429_v1 = vmul.f32 %v4402_v41, %v5600_v12  ;;  %v4433_v4 = vmul.f32 %v4402_v41, %v4271_v55  ;;  %v4444_v58 = vadd.f32 %v5606_v52, %v5602_v43 }
 0x175   : > { %5597 = vst [vmem:[#allocation73_spill] sm:$0xff] %v4417_v2  ;;  %v4440_v31 = vadd.f32 %v927_v10, %v5604_v54  ;;  %v929_v21 = vpop.f32.mrb[31].mxu0  ;;  %2970 = vmatpush1.bf16.msra.mxu1 %v2969_v49  ;;  %3110 = vmatpush3.bf16.msra.mxu0 %v3109_v32  ;;  %v1171_v46 = vmul.f32 %v4395_v51, %v4421_v36  ;;  %v5610_v49 = vld [vmem:[#allocation36_spill] sm:$0xff]  ;;  %v5617_v51 = vld [vmem:[#allocation33_spill] sm:$0xff] }
 0x176   : > { %5601 = vst [vmem:[#allocation17_spill] sm:$0xff] %v4433_v4  ;;  %v4449_v16 = vadd.f32 %v929_v21, %v5604_v54  ;;  %v5609_v11 = vpack.c.bf16 %v4171_v45, %v5608_v15  ;;  %v1172_v10 = vmul.f32 %v4402_v41, %v4425_v29  ;;  %v5612_v15 = vld [vmem:[#allocation38_spill] sm:$0xff]  ;;  %v5616_v21 = vld [vmem:[#allocation32_spill] sm:$0xff]  ;;  %v5620_v40 = vpack.c.bf16 %v4217_v26, %v4227_v35 }
 0x177   : > { %5605 = vst [vmem:[#allocation18_spill] sm:$0xff] %v4440_v31  ;;  %v1174_v32 = vmul.f32 %v4440_v31, %v4437_v14  ;;  %v4460_v43 = vmul.f32 %v4440_v31, %v5610_v49  ;;  %v4464_v52 = vmul.f32 %v4440_v31, %v4274_v3  ;;  %v5618_v31 = vpack.c.bf16 %v5616_v21, %v5617_v51  ;;  %v5626_v21 = vld [vmem:[#allocation41_spill] sm:$0xff] }
 0x178   : > { %5607 = vst [vmem:[#allocation10_spill] sm:$0xff] %v4449_v16  ;;  %3112 = vmatprep.subr.bf16.mxu0 %v5609_v11  ;;  %v933_v54 = vpop.f32.mrb[32].mxu0  ;;  %v1175_v45 = vmul.f32 %v4449_v16, %v4444_v58  ;;  %v4472_v11 = vmul.f32 %v4449_v16, %v5612_v15  ;;  %v4476_v42 = vmul.f32 %v4449_v16, %v4280_v25 }
 0x179   : > { %5611 = vst [vmem:[#allocation20_spill] sm:$0xff] %v4464_v52  ;;  %v4481_v50 = vadd.f32 %v933_v54, %v5614_v28  ;;  %v935_v22 = vpop.f32.mrb[33].mxu0  ;;  %3114 = vmatpush3.bf16.msra.mxu0 %v5618_v31  ;;  %v2973_v44 = vpack.c.bf16 %v1174_v32, %v1171_v46  ;;  %v5625_v32 = vld [vmem:[#allocation40_spill] sm:$0xff]  ;;  %v5633_v52 = vld [vmem:[#allocation15_spill] sm:$0xff] }
 0x17a   : > { %5613 = vst [vmem:[#allocation11_spill] sm:$0xff] %v4476_v42  ;;  %v4491_v61 = vadd.f32 %v935_v22, %v5614_v28  ;;  %3116 = vmatprep.subr.bf16.mxu0 %v5620_v40  ;;  %v2971_v54 = vpack.c.bf16 %v1175_v45, %v1172_v10  ;;  %v5623_v22 = vld [vmem:[#allocation12_spill] sm:$0xff]  ;;  %v5627_v45 = vpack.c.bf16 %v5625_v32, %v5626_v21 }
 0x17b   : > { %5615 = vst [vmem:[#allocation21_spill] sm:$0xff] %v4481_v50  ;;  %v4502_v51 = vmul.f32 %v4481_v50, %v4047_v5  ;;  %v4506_v46 = vmul.f32 %v4481_v50, %v4188_v56  ;;  %v1177_v33 = vmul.f32 %v4481_v50, %v4335_v57  ;;  %v5635_v50 = vpack.c.bf16 %v4249_v39, %v4261_v27  ;;  %v5640_v27 = vld [vmem:[#allocation14_spill] sm:$0xff] }
 0x17c   : > { %5619 = vst [vmem:[#allocation44_spill] sm:$0xff] %v4491_v61  ;;  %v939_v28 = vpop.f32.mrb[34].mxu0  ;;  %2972 = vmatprep.subr.bf16.mxu1 %v2971_v54  ;;  %v4510_v26 = vmul.f32 %v4491_v61, %v4051_v20  ;;  %v4514_v35 = vmul.f32 %v4491_v61, %v4191_v63  ;;  %v4525_v54 = vld [vmem:[%s5382_s3] sm:$0xff] }
 0x17d   : > { %5621 = vst [vmem:[#allocation38_spill] sm:$0xff] %v4506_v46  ;;  %v4517_v40 = vadd.f32 %v939_v28, %v5623_v22  ;;  %v941_v10 = vpop.f32.mrb[35].mxu0  ;;  %2974 = vmatpush1.bf16.msra.mxu1 %v2973_v44  ;;  %3118 = vmatpush3.bf16.msra.mxu0 %v5627_v45  ;;  %5628 = vst [vmem:[#allocation33_spill] sm:$0xff] %v4525_v54  ;;  %v4536_v44 = vld [vmem:[%s5382_s3 + $0x28] sm:$0xff]  ;;  %v1178_v28 = vmul.f32 %v4491_v61, %v4339_v47  ;;  %v5638_v61 = vmov 0.0|0.0  }
 0x17e   : > { %5622 = vst [vmem:[#allocation13_spill] sm:$0xff] %v4514_v35  ;;  %v4530_v31 = vadd.f32 %v941_v10, %v5623_v22  ;;  %3119 = vmatprep.subr.bf16.mxu0 %v5455_v34  ;;  %5630 = vst [vmem:[#allocation40_spill] sm:$0xff] %v4536_v44 }
 0x17f   : > { %5624 = vst [vmem:[#allocation32_spill] sm:$0xff] %v4517_v40  ;;  %v1180_v32 = vmul.f32 %v4517_v40, %v4351_v53  ;;  %v4544_v21 = vmul.f32 %v4517_v40, %v4049_v7  ;;  %v4548_v22 = vmul.f32 %v4517_v40, %v4194_v38  ;;  %v4575_v40 = vld [vmem:[%s5382_s3 + $0x20] sm:$0xff] }
 0x180   : > { %5629 = vst [vmem:[#allocation12_spill] sm:$0xff] %v4530_v31  ;;  %v945_v45 = vpop.f32.mrb[36].mxu0  ;;  %1669 = vmatmul.mubr.f32.vlgmr.msra.gmra.mrb[48].mxu0 %v4525_v54  ;;  %v1181_v41 = vmul.f32 %v4530_v31, %v4358_v48  ;;  %v4557_v34 = vmul.f32 %v4530_v31, %v4053_v23  ;;  %v4561_v16 = vmul.f32 %v4530_v31, %v4200_v30  ;;  %5636 = vst [vmem:[#allocation75_spill] sm:$0xff] %v4575_v40 }
 0x181   : > { %5631 = vst [vmem:[#allocation41_spill] sm:$0xff] %v4548_v22  ;;  %v4566_v4 = vadd.f32 %v945_v45, %v5633_v52  ;;  %v947_v10 = vpop.f32.mrb[37].mxu0  ;;  %3121 = vmatpush1.bf16.msra.mxu0 %v5635_v50  ;;  %1673 = vmatprep.mubr.f32.mxu0 %v4536_v44  ;;  %v2977_v54 = vpack.c.bf16 %v1180_v32, %v1177_v33 }
 0x182   : > { %5632 = vst [vmem:[#allocation74_spill] sm:$0xff] %v4561_v16  ;;  %v4580_v2 = vadd.f32 %v947_v10, %v5633_v52  ;;  %v2975_v45 = vpack.c.bf16 %v1181_v41, %v1178_v28  ;;  %3122 = vmatprep.subr.bf16.mxu0 %v5638_v61  ;;  %v4598_v41 = vld [vmem:[%s5382_s3 + $0x48] sm:$0xff]  ;;  %v5642_v52 = vpack.c.bf16 %v4293_v0, %v4305_v13 }
 0x183   : > { %5634 = vst [vmem:[#allocation15_spill] sm:$0xff] %v4566_v4  ;;  %v4589_v50 = vmul.f32 %v4566_v4, %v4100_v37  ;;  %v4593_v33 = vmul.f32 %v4566_v4, %v4268_v19  ;;  %5639 = vst [vmem:[#allocation77_spill] sm:$0xff] %v4598_v41  ;;  %v1183_v31 = vmul.f32 %v4566_v4, %v4421_v36  ;;  %v4632_v0 = vld [vmem:[%s5382_s3 + $0x68] sm:$0xff] }
 0x184   : > { %5637 = vst [vmem:[#allocation76_spill] sm:$0xff] %v4580_v2  ;;  %v951_v28 = vpop.f32.mrb[38].mxu0  ;;  %2976 = vmatprep.subr.bf16.mxu1 %v2975_v45  ;;  %1674 = vmatmul.mubr.f32.gmra.mrb[50].mxu0 %v4575_v40  ;;  %v4605_v32 = vmul.f32 %v4580_v2, %v5600_v12  ;;  %v4609_v10 = vmul.f32 %v4580_v2, %v4271_v55  ;;  %v4620_v45 = vld [vmem:[%s5382_s3 + $0x40] sm:$0xff] }
 0x185   : > { %v4612_v42 = vadd.f32 %v951_v28, %v5640_v27  ;;  %v953_v39 = vpop.f32.mrb[39].mxu0  ;;  %2978 = vmatpush1.bf16.msra.mxu1 %v2977_v54  ;;  %3124 = vmatpush1.bf16.msra.mxu0 %v5642_v52  ;;  %5643 = vst [vmem:[#allocation78_spill] sm:$0xff] %v4620_v45  ;;  %v1184_v13 = vmul.f32 %v4580_v2, %v4425_v29 }
 0x186   : > { %v4625_v40 = vadd.f32 %v953_v39, %v5640_v27  ;;  %1678 = vmatprep.mubr.f32.mxu0 %v4598_v41  ;;  %3125 = vmatprep.subr.bf16.mxu0 %v5638_v61  ;;  %v5646_v4 = vpack.c.bf16 %v3986_v8, %v3989_v9 }
 0x187   : > { %5641 = vst [vmem:[#allocation14_spill] sm:$0xff] %v4612_v42  ;;  %v1186_v54 = vmul.f32 %v4612_v42, %v4437_v14  ;;  %v4640_v52 = vmul.f32 %v4612_v42, %v5610_v49  ;;  %v4644_v39 = vmul.f32 %v4612_v42, %v4274_v3  ;;  %v4671_v42 = vld [vmem:[%s5382_s3 + $0x60] sm:$0xff] }
 0x188   : > { %5644 = vst [vmem:[#allocation79_spill] sm:$0xff] %v4625_v40  ;;  %v957_v28 = vpop.f32.mrb[40].mxu0  ;;  %1679 = vmatmul.mubr.f32.gmra.mrb[52].mxu0 %v4620_v45  ;;  %v1187_v41 = vmul.f32 %v4625_v40, %v4444_v58  ;;  %v4653_v44 = vmul.f32 %v4625_v40, %v5612_v15  ;;  %v4657_v46 = vmul.f32 %v4625_v40, %v4280_v25 }
 0x189   : > { %v4662_v35 = vadd.f32 %v957_v28, %v3975_v60  ;;  %v959_v27 = vpop.f32.mrb[41].mxu0  ;;  %3127 = vmatpush1.bf16.msra.mxu0 %v5646_v4  ;;  %1683 = vmatprep.mubr.f32.mxu0 %v4632_v0  ;;  %v2981_v45 = vpack.c.bf16 %v1186_v54, %v1183_v31 }
 0x18a   : > { %v4676_v22 = vadd.f32 %v959_v27, %v3975_v60  ;;  %v2979_v28 = vpack.c.bf16 %v1187_v41, %v1184_v13  ;;  %3128 = vmatprep.subr.bf16.mxu0 %v5638_v61  ;;  %v4694_v60 = vld [vmem:[%s5382_s3 + $0x88] sm:$0xff]  ;;  %v5649_v41 = vpack.c.bf16 %v4002_v17, %v4005_v18 }
 0x18b   : > { %5645 = vst [vmem:[#allocation80_spill] sm:$0xff] %v4662_v35  ;;  %v4685_v4 = vmul.f32 %v4662_v35, %v4047_v5  ;;  %v4689_v31 = vmul.f32 %v4662_v35, %v4188_v56  ;;  %v1189_v8 = vmul.f32 %v4662_v35, %v4335_v57  ;;  %v4728_v17 = vld [vmem:[%s5382_s3 + $0xa8] sm:$0xff]  ;;  %v5653_v35 = vld [vmem:[#allocation19_spill] sm:$0xff] }
 0x18c   : > { %5647 = vst [vmem:[#allocation81_spill] sm:$0xff] %v4676_v22  ;;  %v963_v13 = vpop.f32.mrb[42].mxu0  ;;  %2980 = vmatprep.subr.bf16.mxu1 %v2979_v28  ;;  %1684 = vmatmul.mubr.f32.gmra.mrb[54].mxu0 %v4671_v42  ;;  %v4701_v54 = vmul.f32 %v4676_v22, %v4051_v20  ;;  %v4705_v27 = vmul.f32 %v4676_v22, %v4191_v63  ;;  %v4716_v28 = vld [vmem:[%s5382_s3 + $0x80] sm:$0xff] }
 0x18d   : > { %v4708_v9 = vadd.f32 %v963_v13, %v3973_v59  ;;  %v965_v16 = vpop.f32.mrb[43].mxu0  ;;  %2982 = vmatpush1.bf16.msra.mxu1 %v2981_v45  ;;  %3130 = vmatpush1.bf16.msra.mxu0 %v5649_v41  ;;  %5650 = vst [vmem:[#allocation83_spill] sm:$0xff] %v4716_v28  ;;  %v1190_v18 = vmul.f32 %v4676_v22, %v4339_v47  ;;  %v5659_v22 = vld [vmem:[#allocation22_spill] sm:$0xff] }
 0x18e   : > { %v4721_v2 = vadd.f32 %v965_v16, %v3973_v59  ;;  %1688 = vmatprep.mubr.f32.mxu0 %v4694_v60  ;;  %3131 = vmatprep.subr.bf16.mxu0 %v5638_v61 }
 0x18f   : > { %5648 = vst [vmem:[#allocation82_spill] sm:$0xff] %v4708_v9  ;;  %v1192_v45 = vmul.f32 %v4708_v9, %v4351_v53  ;;  %v4736_v41 = vmul.f32 %v4708_v9, %v4049_v7  ;;  %v4740_v59 = vmul.f32 %v4708_v9, %v4194_v38  ;;  %v5654_v9 = vpack.c.bf16 %v4013_v24, %v5653_v35  ;;  %v4767_v7 = vld [vmem:[%s5382_s3 + $0xa0] sm:$0xff] }
 0x190   : > { %5651 = vst [vmem:[#allocation84_spill] sm:$0xff] %v4721_v2  ;;  %v969_v13 = vpop.f32.mrb[44].mxu0  ;;  %1689 = vmatmul.mubr.f32.gmra.mrb[56].mxu0 %v4716_v28  ;;  %v1193_v40 = vmul.f32 %v4721_v2, %v4358_v48  ;;  %v4749_v56 = vmul.f32 %v4721_v2, %v4053_v23  ;;  %v4753_v63 = vmul.f32 %v4721_v2, %v4200_v30  ;;  %5655 = vst [vmem:[#allocation19_spill] sm:$0xff] %v4767_v7  ;;  %v5657_v35 = vld [vmem:[#allocation16_spill] sm:$0xff]  ;;  %v5660_v2 = vld [vmem:[#allocation23_spill] sm:$0xff] }
 0x191   : > { %v4758_v5 = vadd.f32 %v969_v13, %v3979_v62  ;;  %v971_v16 = vpop.f32.mrb[45].mxu0  ;;  %3133 = vmatpush1.bf16.msra.mxu0 %v5654_v9  ;;  %1693 = vmatprep.mubr.f32.mxu0 %v4728_v17  ;;  %v2985_v30 = vpack.c.bf16 %v1192_v45, %v1189_v8 }
 0x192   : > { %v4772_v38 = vadd.f32 %v971_v16, %v3979_v62  ;;  %v2983_v13 = vpack.c.bf16 %v1193_v40, %v1190_v18  ;;  %3134 = vmatprep.subr.bf16.mxu0 %v5638_v61  ;;  %v4790_v62 = vld [vmem:[%s5382_s3 + $0xc8] sm:$0xff] }
 0x193   : > { %5652 = vst [vmem:[#allocation85_spill] sm:$0xff] %v4758_v5  ;;  %v4781_v9 = vmul.f32 %v4758_v5, %v4100_v37  ;;  %v4785_v8 = vmul.f32 %v4758_v5, %v4268_v19  ;;  %5656 = vst [vmem:[#allocation86_spill] sm:$0xff] %v4790_v62  ;;  %v5661_v19 = vpack.c.bf16 %v5659_v22, %v5660_v2 }
 0x194   : > { %v975_v18 = vpop.f32.mrb[46].mxu0  ;;  %2984 = vmatprep.subr.bf16.mxu1 %v2983_v13  ;;  %1694 = vmatmul.mubr.f32.gmra.mrb[58].mxu0 %v4767_v7  ;;  %v1232_v45 = vmul.f32 %v4772_v38, %v5600_v12  ;;  %v4799_v16 = vmul.f32 %v4772_v38, %v4271_v55  ;;  %v4810_v13 = vld [vmem:[%s5382_s3 + $0xc0] sm:$0xff]  ;;  %v1195_v40 = vmul.f32 %v4758_v5, %v4421_v36 }
 0x195   : > { %v4802_v28 = vadd.f32 %v975_v18, %v5657_v35  ;;  %v977_v24 = vpop.f32.mrb[47].mxu0  ;;  %2986 = vmatpush1.bf16.msra.mxu1 %v2985_v30  ;;  %3136 = vmatpush1.bf16.msra.mxu0 %v5661_v19  ;;  %5662 = vst [vmem:[#allocation22_spill] sm:$0xff] %v4810_v13  ;;  %v4822_v30 = vld [vmem:[%s5382_s3 + $0xe8] sm:$0xff]  ;;  %v1196_v19 = vmul.f32 %v4772_v38, %v4425_v29 }
 0x196   : > { %v4815_v55 = vadd.f32 %v977_v24, %v5657_v35  ;;  %1698 = vmatprep.mubr.f32.mxu0 %v4790_v62  ;;  %3137 = vmatprep.subr.bf16.mxu0 %v5638_v61  ;;  %v5664_v7 = vld [vmem:[#allocation25_spill] sm:$0xff] }
 0x197   : > { %5658 = vst [vmem:[#allocation16_spill] sm:$0xff] %v4802_v28  ;;  %v1198_v2 = vmul.f32 %v4802_v28, %v4437_v14  ;;  %v1234_v22 = vmul.f32 %v4802_v28, %v5610_v49  ;;  %v4832_v24 = vmul.f32 %v4802_v28, %v4274_v3  ;;  %v5663_v3 = vld [vmem:[#allocation24_spill] sm:$0xff] }
 0x198   : > { %1699 = vmatmul.mubr.f32.gmra.mrb[60].mxu0 %v4810_v13  ;;  %v1199_v18 = vmul.f32 %v4815_v55, %v4444_v58  ;;  %v1235_v62 = vmul.f32 %v4815_v55, %v5612_v15  ;;  %v4843_v37 = vmul.f32 %v4815_v55, %v4280_v25  ;;  %v5665_v12 = vpack.c.bf16 %v5663_v3, %v5664_v7  ;;  %v4854_v35 = vld [vmem:[%s5382_s3 + $0xe0] sm:$0xff]  ;;  %v4866_v3 = vld [vmem:[%s5382_s3 + $0x18] sm:$0xff] }
 0x199   : > { %1703 = vmatprep.mubr.f32.mxu0 %v4822_v30  ;;  %v2989_v5 = vpack.c.bf16 %v1198_v2, %v1195_v40  ;;  %v3013_v28 = vpack.c.bf16 %v1234_v22, %v4781_v9  ;;  %v5667_v9 = vld [vmem:[#allocation29_spill] sm:$0xff]  ;;  %v5670_v2 = vld [vmem:[#allocation63_spill] sm:$0xff] }
 0x19a   : > { %3139 = vmatpush1.bf16.msra.mxu0 %v5665_v12  ;;  %v2987_v13 = vpack.c.bf16 %v1199_v18, %v1196_v19  ;;  %v3011_v49 = vpack.c.bf16 %v1235_v62, %v1232_v45  ;;  %v3035_v7 = vpack.c.bf16 %v4843_v37, %v4799_v16  ;;  %v5666_v12 = vld [vmem:[#allocation28_spill] sm:$0xff]  ;;  %v5669_v19 = vld [vmem:[#allocation69_spill] sm:$0xff]  ;;  %v5672_v45 = vld [vmem:[#allocation67_spill] sm:$0xff] }
 0x19b   : > { %3140 = vmatprep.subr.bf16.mxu0 %v5638_v61  ;;  %v5668_v40 = vpack.c.bf16 %v5666_v12, %v5667_v9  ;;  %v5671_v62 = vpack.c.bf16 %v5669_v19, %v5670_v2  ;;  %v5675_v18 = vld [vmem:[#allocation30_spill] sm:$0xff]  ;;  %v5676_v25 = vld [vmem:[#allocation31_spill] sm:$0xff]  ;;  %v5678_v12 = vpack.c.bf16 %v4472_v11, %v4429_v1  ;;  %v5679_v9 = vpack.c.bf16 %v4460_v43, %v4413_v6  ;;  %v5690_v43 = vld [vmem:[#allocation48_spill] sm:$0xff] }
 0x19c   : > { %2988 = vmatprep.subr.bf16.mxu1 %v2987_v13  ;;  %1704 = vmatmul.mubr.f32.gmra.mrb[62].mxu0 %v4854_v35  ;;  %v5673_v13 = vld [vmem:[#allocation61_spill] sm:$0xff]  ;;  %v5681_v19 = vld [vmem:[#allocation39_spill] sm:$0xff]  ;;  %v5685_v1 = vld [vmem:[#allocation42_spill] sm:$0xff]  ;;  %v5688_v6 = vpack.c.bf16 %v4653_v44, %v4605_v32  ;;  %v5694_v44 = vpack.c.bf16 %v4736_v41, %v4685_v4 }
 0x19d   : > { %2990 = vmatpush1.bf16.msra.mxu1 %v2989_v5  ;;  %2637 = vmatprep.mubr.msk.f32.mxu0 %vm1353_vm8, %v4866_v3  ;;  %v5674_v22 = vpack.c.bf16 %v5672_v45, %v5673_v13  ;;  %v5677_v5 = vpack.c.bf16 %v5675_v18, %v5676_v25  ;;  %v5684_v25 = vpack.c.bf16 %v4544_v21, %v4502_v51  ;;  %v5686_v11 = vld [vmem:[#allocation43_spill] sm:$0xff]  ;;  %v5696_v32 = vld [vmem:[#allocation52_spill] sm:$0xff] }
 0x19e   : > { %3142 = vmatpush1.bf16.msra.mxu0 %v5668_v40  ;;  %2992 = vmatprep.subr.bf16.mxu1 %v5671_v62  ;;  %v5680_v40 = vld [vmem:[#allocation37_spill] sm:$0xff]  ;;  %v5683_v62 = vpack.c.bf16 %v4557_v34, %v4510_v26  ;;  %v5687_v45 = vpack.c.bf16 %v5685_v1, %v5686_v11  ;;  %v5689_v34 = vpack.c.bf16 %v4640_v52, %v4589_v50  ;;  %v5691_v26 = vld [vmem:[#allocation50_spill] sm:$0xff]  ;;  %v5695_v21 = vld [vmem:[#allocation51_spill] sm:$0xff] }
 0x19f   : > { %3143 = vmatprep.subr.bf16.mxu0 %v5638_v61  ;;  %v5682_v2 = vpack.c.bf16 %v5680_v40, %v5681_v19  ;;  %v5692_v13 = vpack.c.bf16 %v5690_v43, %v5691_v26  ;;  %v5693_v51 = vpack.c.bf16 %v4749_v56, %v4701_v54  ;;  %v5698_v50 = vld [vmem:[#allocation56_spill] sm:$0xff]  ;;  %v5699_v52 = vld [vmem:[#allocation58_spill] sm:$0xff]  ;;  %v5707_v40 = vld [vmem:[#allocation11_spill] sm:$0xff] }
 0x1a0   : > { %v5700_v18 = vpack.c.bf16 %v5698_v50, %v5699_v52  ;;  %v4930_v56 = vld [vmem:[%s5382_s3 + $0x10] sm:$0xff]  ;;  %v5702_v4 = vld [vmem:[#allocation64_spill] sm:$0xff]  ;;  %v5708_v19 = vld [vmem:[#allocation17_spill] sm:$0xff]  ;;  %v5720_v50 = vpack.c.bf16 %v4644_v39, %v4593_v33  ;;  %v5723_v39 = vpack.c.bf16 %v4740_v59, %v4689_v31  ;;  %v3039_v31 = vpack.c.bf16 %v4358_v48, %v4339_v47 }
 0x1a1   : > { %2994 = vmatpush1.bf16.msra.mxu1 %v5674_v22  ;;  %v5697_v22 = vpack.c.bf16 %v5695_v21, %v5696_v32  ;;  %v5701_v54 = vld [vmem:[#allocation70_spill] sm:$0xff]  ;;  %v5711_v1 = vld [vmem:[#allocation73_spill] sm:$0xff]  ;;  %v4976_v26 = vld [vmem:[%s5382_s3 + $0x78] sm:$0xff]  ;;  %v5719_v32 = vpack.c.bf16 %v4657_v46, %v4609_v10  ;;  %v5721_v46 = vpack.c.bf16 %v4753_v63, %v4705_v27  ;;  %v3041_v47 = vpack.c.bf16 %v4351_v53, %v4335_v57 }
 0x1a2   : > { %3145 = vmatpush1.bf16.msra.mxu0 %v5677_v5  ;;  %2996 = vmatprep.subr.bf16.mxu1 %v5678_v12  ;;  %v5703_v41 = vpack.c.bf16 %v5701_v54, %v5702_v4  ;;  %v5705_v5 = vld [vmem:[#allocation62_spill] sm:$0xff]  ;;  %v5014_v10 = vld [vmem:[%s5382_s3 + $0xb8] sm:$0xff]  ;;  %v5722_v33 = vld [vmem:[#allocation33_spill] sm:$0xff]  ;;  %v5726_v54 = vpack.c.bf16 %v4832_v24, %v4785_v8  ;;  %v3043_v48 = vpack.c.bf16 %v4444_v58, %v4425_v29 }
 0x1a3   : > { %3146 = vmatprep.subr.bf16.mxu0 %v5638_v61  ;;  %v4987_v21 = vld [vmem:[%s5382_s3 + $0x70] sm:$0xff]  ;;  %v5034_v27 = vld [vmem:[%s5382_s3 + $0xd8] sm:$0xff]  ;;  %v3045_v4 = vpack.c.bf16 %v4437_v14, %v4421_v36  ;;  %v5729_v57 = vpack.c.bf16 %v4053_v23, %v4051_v20  ;;  %v5741_v23 = vld [vmem:[#allocation49_spill] sm:$0xff] }
 0x1a4   : > { %v5006_v52 = vld [vmem:[%s5382_s3 + $0x90] sm:$0xff]  ;;  %v1304_v16 = vld [vmem:[%s5382_s3 + $0xf8] sm:$0xff] }
 0x1a5   : > { %2998 = vmatpush1.bf16.msra.mxu1 %v5679_v9  ;;  %v4949_v9 = vld [vmem:[%s5382_s3 + $0x30] sm:$0xff] }
 0x1a6   : > { %3148 = vmatpush1.bf16.msra.mxu0 %v5682_v2  ;;  %3000 = vmatprep.subr.bf16.mxu1 %v5683_v62  ;;  %v5709_v2 = vpack.c.bf16 %v5707_v40, %v5708_v19  ;;  %v4957_v62 = vld [vmem:[%s5382_s3 + $0x58] sm:$0xff]  ;;  %v5026_v63 = vld [vmem:[%s5382_s3 + $0xb0] sm:$0xff] }
 0x1a7   : > { %3149 = vmatprep.subr.bf16.mxu0 %v5638_v61  ;;  %v5725_v59 = vld [vmem:[#allocation75_spill] sm:$0xff]  ;;  %v5728_v8 = vld [vmem:[#allocation78_spill] sm:$0xff] }
 0x1a8   : > { %v1299_v37 = vld [vmem:[%s5382_s3 + $0xd0] sm:$0xff] }
 0x1a9   : > { %3002 = vmatpush1.bf16.msra.mxu1 %v5684_v25  ;;  %v5710_v25 = vld [vmem:[#allocation20_spill] sm:$0xff]  ;;  %v1303_v24 = vld [vmem:[%s5382_s3 + $0xf0] sm:$0xff] }
 0x1aa   : > { %3151 = vmatpush1.bf16.msra.mxu0 %v5687_v45  ;;  %3004 = vmatprep.subr.bf16.mxu1 %v5688_v6  ;;  %v5712_v11 = vpack.c.bf16 %v5710_v25, %v5711_v1  ;;  %v4968_v45 = vld [vmem:[%s5382_s3 + $0x50] sm:$0xff] }
 0x1ab   : > { %3152 = vmatprep.subr.bf16.mxu0 %v5638_v61  ;;  %v5713_v6 = vld [vmem:[#allocation74_spill] sm:$0xff]  ;;  %v5730_v53 = vld [vmem:[#allocation83_spill] sm:$0xff] }
 0x1ac   : > { %v5731_v29 = vld [vmem:[#allocation27_spill] sm:$0xff]  ;;  %v5732_v58 = vld [vmem:[#allocation26_spill] sm:$0xff] }
 0x1ad   : > { %3006 = vmatpush1.bf16.msra.mxu1 %v5689_v34  ;;  %v5714_v34 = vld [vmem:[#allocation13_spill] sm:$0xff]  ;;  %v5734_v14 = vld [vmem:[#allocation35_spill] sm:$0xff]  ;;  %v5740_v20 = vld [vmem:[#allocation86_spill] sm:$0xff] }
 0x1ae   : > { %3154 = vmatpush1.bf16.msra.mxu0 %v5692_v13  ;;  %3008 = vmatprep.subr.bf16.mxu1 %v5693_v51  ;;  %v5715_v43 = vpack.c.bf16 %v5713_v6, %v5714_v34  ;;  %v5716_v13 = vld [vmem:[#allocation41_spill] sm:$0xff]  ;;  %v5717_v51 = vld [vmem:[#allocation38_spill] sm:$0xff]  ;;  %v5735_v36 = vpack.c.bf16 %v5612_v15, %v5734_v14  ;;  %v5745_v19 = vld [vmem:[#allocation47_spill] sm:$0xff] }
 0x1af   : > { %3155 = vmatprep.subr.bf16.mxu0 %v5638_v61  ;;  %v5744_v40 = vld [vmem:[#allocation22_spill] sm:$0xff]  ;;  %v5748_v15 = vld [vmem:[#allocation57_spill] sm:$0xff] }
 0x1b0   : > { %v5749_v25 = vld [vmem:[#allocation54_spill] sm:$0xff]  ;;  %v5752_v6 = vld [vmem:[#allocation53_spill] sm:$0xff] }
 0x1b1   : > { %3010 = vmatpush1.bf16.msra.mxu1 %v5694_v44  ;;  %v5718_v44 = vpack.c.bf16 %v5716_v13, %v5717_v51  ;;  %v5750_v1 = vpack.c.bf16 %v5748_v15, %v5749_v25  ;;  %v5755_v13 = vld [vmem:[#allocation60_spill] sm:$0xff] }
 0x1b2   : > { %3157 = vmatpush1.bf16.msra.mxu0 %v5697_v22  ;;  %3012 = vmatprep.subr.bf16.mxu1 %v3011_v49  ;;  %v4938_v49 = vld [vmem:[%s5382_s3 + $0x38] sm:$0xff] }
 0x1b3   : > { %3158 = vmatprep.subr.bf16.mxu0 %v5638_v61  ;;  %v4995_v22 = vld [vmem:[%s5382_s3 + $0x98] sm:$0xff] }
 0x1b5   : > { %3014 = vmatpush1.bf16.msra.mxu1 %v3013_v28  ;;  %v5704_v28 = vld [vmem:[#allocation68_spill] sm:$0xff] }
 0x1b6   : > { %3160 = vmatpush1.bf16.msra.mxu0 %v5700_v18  ;;  %3016 = vmatprep.subr.bf16.mxu1 %v5703_v41  ;;  %v5706_v12 = vpack.c.bf16 %v5704_v28, %v5705_v5  ;;  %v5724_v18 = vld [vmem:[#allocation40_spill] sm:$0xff]  ;;  %v5733_v41 = vpack.c.bf16 %v5731_v29, %v5732_v58  ;;  %v5742_v5 = vld [vmem:[#allocation46_spill] sm:$0xff] }
 0x1b7   : > { %v5778_v58 = vld [vmem:[#allocation84_spill] sm:$0xff] }
 0x1b9   : > { %1774 = vmatmul.mubr.f32.vlgmr.msra.gmra.mrb[64].mxu0 %v4930_v56  ;;  %3018 = vmatpush1.bf16.msra.mxu1 %v5706_v12  ;;  %v5743_v12 = vpack.c.bf16 %v5741_v23, %v5742_v5 }
 0x1ba   : > { %2638 = vmatprep.mubr.msk.f32.mxu0 %vm1353_vm8, %v4938_v49  ;;  %3020 = vmatprep.subr.bf16.mxu1 %v5709_v2 }
 0x1bd   : > { %1779 = vmatmul.mubr.f32.gmra.mrb[66].mxu0 %v4949_v9  ;;  %3022 = vmatpush1.bf16.msra.mxu1 %v5712_v11  ;;  %v5751_v11 = vld [vmem:[#allocation55_spill] sm:$0xff] }
 0x1be   : > { %2639 = vmatprep.mubr.msk.f32.mxu0 %vm1353_vm8, %v4957_v62  ;;  %3024 = vmatprep.subr.bf16.mxu1 %v5715_v43  ;;  %v5753_v34 = vpack.c.bf16 %v5751_v11, %v5752_v6  ;;  %v5754_v43 = vld [vmem:[#allocation66_spill] sm:$0xff]  ;;  %v5163_v11 = vpop.permute.xlu0 %1315 }
 0x1bf   : > { %v5756_v51 = vpack.c.bf16 %v5754_v43, %v5755_v13 }
 0x1c1   : > { %1784 = vmatmul.mubr.f32.gmra.mrb[68].mxu0 %v4968_v45  ;;  %3026 = vmatpush1.bf16.msra.mxu1 %v5718_v44  ;;  %v5757_v44 = vld [vmem:[#allocation65_spill] sm:$0xff] }
 0x1c2   : > { %2640 = vmatprep.mubr.msk.f32.mxu0 %vm1353_vm8, %v4976_v26  ;;  %3028 = vmatprep.subr.bf16.mxu1 %v5719_v32  ;;  %v5758_v32 = vld [vmem:[#allocation59_spill] sm:$0xff] }
 0x1c5   : > { %1789 = vmatmul.mubr.f32.gmra.mrb[70].mxu0 %v4987_v21  ;;  %3030 = vmatpush1.bf16.msra.mxu1 %v5720_v50  ;;  %v5760_v50 = vld [vmem:[#allocation10_spill] sm:$0xff] }
 0x1c6   : > { %2641 = vmatprep.mubr.msk.f32.mxu0 %vm1353_vm8, %v4995_v22  ;;  %3032 = vmatprep.subr.bf16.mxu1 %v5721_v46  ;;  %v5761_v46 = vld [vmem:[#allocation72_spill] sm:$0xff] }
 0x1c8   : > { %1443 = vmatmul.mubr.f32.vlgmr.msra.gmra.mrb[24].mxu1 %v5722_v33  ;;  %v5762_v33 = vpack.c.bf16 %v5760_v50, %v5761_v46 }
 0x1c9   : > { %1794 = vmatmul.mubr.f32.gmra.mrb[72].mxu0 %v5006_v52  ;;  %3034 = vmatpush1.bf16.msra.mxu1 %v5723_v39  ;;  %v5764_v39 = vld [vmem:[#allocation71_spill] sm:$0xff] }
 0x1ca   : > { %2642 = vmatprep.mubr.msk.f32.mxu0 %vm1353_vm8, %v5014_v10  ;;  %3036 = vmatprep.subr.bf16.mxu1 %v3035_v7  ;;  %v5727_v7 = vld [vmem:[#allocation77_spill] sm:$0xff] }
 0x1cb   : > { %1448 = vmatprep.mubr.f32.mxu1 %v5724_v18 }
 0x1cc   : > { %1449 = vmatmul.mubr.f32.gmra.mrb[26].mxu1 %v5725_v59  ;;  %v5767_v59 = vld [vmem:[#allocation44_spill] sm:$0xff] }
 0x1cd   : > { %1799 = vmatmul.mubr.f32.gmra.mrb[74].mxu0 %v5026_v63  ;;  %3038 = vmatpush1.bf16.msra.mxu1 %v5726_v54 }
 0x1ce   : > { %2643 = vmatprep.mubr.msk.f32.mxu0 %vm1353_vm8, %v5034_v27  ;;  %3040 = vmatprep.subr.bf16.mxu1 %v3039_v31  ;;  %v5766_v31 = vld [vmem:[#allocation12_spill] sm:$0xff] }
 0x1cf   : > { %1454 = vmatprep.mubr.f32.mxu1 %v5727_v7  ;;  %v5768_v54 = vpack.c.bf16 %v5766_v31, %v5767_v59  ;;  %v5770_v7 = vld [vmem:[#allocation21_spill] sm:$0xff] }
 0x1d0   : > { %1455 = vmatmul.mubr.f32.gmra.mrb[28].mxu1 %v5728_v8  ;;  %v5773_v8 = vld [vmem:[#allocation76_spill] sm:$0xff] }
 0x1d1   : > { %1804 = vmatmul.mubr.f32.gmra.mrb[76].mxu0 %v1299_v37  ;;  %3042 = vmatpush1.bf16.msra.mxu1 %v3041_v47 }
 0x1d2   : > { %2644 = vmatprep.mubr.msk.f32.mxu0 %vm1353_vm8, %v1304_v16  ;;  %3044 = vmatprep.subr.bf16.mxu1 %v3043_v48  ;;  %v5772_v48 = vld [vmem:[#allocation79_spill] sm:$0xff] }
 0x1d3   : > { %1460 = vmatprep.mubr.f32.mxu1 %v4632_v0  ;;  %v5737_v0 = vld [vmem:[#allocation36_spill] sm:$0xff] }
 0x1d4   : > { %1461 = vmatmul.mubr.f32.gmra.mrb[30].mxu1 %v4671_v42  ;;  %v5736_v42 = vld [vmem:[#allocation19_spill] sm:$0xff] }
 0x1d5   : > { %1809 = vmatmul.mubr.f32.gmra.mrb[78].mxu0 %v1303_v24  ;;  %3046 = vmatpush1.bf16.msra.mxu1 %v3045_v4  ;;  %v5774_v4 = vpack.c.bf16 %v5772_v48, %v5773_v8 }
 0x1d6   : > { %1466 = vmatprep.mubr.f32.mxu1 %v4694_v60  ;;  %3048 = vmatprep.subr.bf16.mxu1 %v5729_v57  ;;  %v5738_v60 = vld [vmem:[#allocation34_spill] sm:$0xff] }
 0x1d7   : > { %v5739_v28 = vpack.c.bf16 %v5737_v0, %v5738_v60  ;;  %v5775_v57 = vld [vmem:[#allocation14_spill] sm:$0xff]  ;;  %v5784_v60 = vpack.c.bf16 %v4815_v55, %v4772_v38  ;;  %v5788_v38 = vmov 0.0   ;;  %v5159_v55 = vld [vmem:[%s5384_s5] sm:$0xff] }
 0x1d8   : > { %1467 = vmatmul.mubr.f32.gmra.mrb[32].mxu1 %v5730_v53  ;;  %v5776_v53 = vld [vmem:[#allocation15_spill] sm:$0xff]  ;;  %2872 = vmatprep.mubr.msk.f32.mxu0 %vm1942_vm9, %v5159_v55 }
 0x1d9   : > { %3050 = vmatpush1.bf16.msra.mxu1 %v5733_v41  ;;  %1472 = vmatprep.mubr.f32.mxu1 %v4728_v17  ;;  %v5746_v17 = vld [vmem:[#allocation45_spill] sm:$0xff]  ;;  %v5777_v29 = vpack.c.bf16 %v5775_v57, %v5776_v53 }
 0x1da   : > { %3052 = vmatprep.subr.bf16.mxu1 %v5735_v36  ;;  %v5747_v2 = vpack.c.bf16 %v5745_v19, %v5746_v17  ;;  %v5779_v41 = vld [vmem:[#allocation81_spill] sm:$0xff]  ;;  %v5781_v36 = vld [vmem:[#allocation82_spill] sm:$0xff] }
 0x1db   : > { %v5780_v14 = vpack.c.bf16 %v5778_v58, %v5779_v41 }
 0x1dc   : > { %1473 = vmatmul.mubr.f32.gmra.mrb[34].mxu1 %v5736_v42  ;;  %v5782_v42 = vld [vmem:[#allocation80_spill] sm:$0xff] }
 0x1dd   : > { %3054 = vmatpush1.bf16.msra.mxu1 %v5739_v28  ;;  %1478 = vmatprep.mubr.f32.mxu1 %v5740_v20  ;;  %v5783_v0 = vpack.c.bf16 %v5781_v36, %v5782_v42  ;;  %v5785_v28 = vld [vmem:[#allocation16_spill] sm:$0xff]  ;;  %v5786_v20 = vld [vmem:[#allocation85_spill] sm:$0xff] }
 0x1de   : > { %3056 = vmatprep.subr.bf16.mxu1 %v5743_v12  ;;  %v5787_v23 = vpack.c.bf16 %v5785_v28, %v5786_v20 }
 0x1e0   : > { %1479 = vmatmul.mubr.f32.gmra.mrb[36].mxu1 %v5744_v40 }
 0x1e1   : > { %3058 = vmatpush1.bf16.msra.mxu1 %v5747_v2  ;;  %1484 = vmatprep.mubr.f32.mxu1 %v4822_v30  ;;  %v5759_v30 = vpack.c.bf16 %v5757_v44, %v5758_v32 }
 0x1e2   : > { %3060 = vmatprep.subr.bf16.mxu1 %v5750_v1 }
 0x1e4   : > { %1485 = vmatmul.mubr.f32.gmra.mrb[38].mxu1 %v4854_v35  ;;  %v5763_v35 = vld [vmem:[#allocation18_spill] sm:$0xff] }
 0x1e5   : > { %3062 = vmatpush1.bf16.msra.mxu1 %v5753_v34  ;;  %2629 = vmatprep.mubr.msk.f32.mxu1 %vm1353_vm8, %v4866_v3  ;;  %v5765_v18 = vpack.c.bf16 %v5763_v35, %v5764_v39  ;;  %v5769_v3 = vld [vmem:[#allocation32_spill] sm:$0xff] }
 0x1e6   : > { %3064 = vmatprep.subr.bf16.mxu1 %v5756_v51  ;;  %v5771_v47 = vpack.c.bf16 %v5769_v3, %v5770_v7  ;;  %v5166_v51 = vpop.permute.xlu1 %1320 }
 0x1e9   : > { %3066 = vmatpush1.bf16.msra.mxu1 %v5759_v30 }
 0x1ea   : > { %3068 = vmatprep.subr.bf16.mxu1 %v5762_v33  ;;  %v5169_v33 = vpop.permute.xlu0 %1325  ;;  %v5172_v7 = vpop.permute.xlu1 %1330 }
 0x1ed   : > { %3070 = vmatpush1.bf16.msra.mxu1 %v5765_v18 }
 0x1ee   : > { %3072 = vmatprep.subr.bf16.mxu1 %v5768_v54  ;;  %v5178_v28 = vpop.permute.xlu1 %1340 }
 0x1f1   : > { %3074 = vmatpush1.bf16.msra.mxu1 %v5771_v47 }
 0x1f2   : > { %3076 = vmatprep.subr.bf16.mxu1 %v5774_v4 }
 0x1f5   : > { %3078 = vmatpush1.bf16.msra.mxu1 %v5777_v29  ;;  %v5175_v29 = vpop.permute.xlu0 %1335 }
 0x1f6   : > { %3080 = vmatprep.subr.bf16.mxu1 %v5780_v14 }
 0x1f9   : > { %3082 = vmatpush1.bf16.msra.mxu1 %v5783_v0 }
 0x1fa   : > { %3084 = vmatprep.subr.bf16.mxu1 %v5784_v60 }
 0x1fd   : > { %3086 = vmatpush1.bf16.msra.mxu1 %v5787_v23 }
 0x200   : > { %1556 = vmatmul.mubr.f32.vlgmr.msra.gmra.mrb[24].mxu1 %v4930_v56 }
 0x201   : > { %2630 = vmatprep.mubr.msk.f32.mxu1 %vm1353_vm8, %v4938_v49 }
 0x204   : > { %1562 = vmatmul.mubr.f32.gmra.mrb[26].mxu1 %v4949_v9 }
 0x205   : > { %2631 = vmatprep.mubr.msk.f32.mxu1 %vm1353_vm8, %v4957_v62 }
 0x208   : > { %1568 = vmatmul.mubr.f32.gmra.mrb[28].mxu1 %v4968_v45 }
 0x209   : > { %2632 = vmatprep.mubr.msk.f32.mxu1 %vm1353_vm8, %v4976_v26 }
 0x20c   : > { %1574 = vmatmul.mubr.f32.gmra.mrb[30].mxu1 %v4987_v21 }
 0x20d   : > { %2633 = vmatprep.mubr.msk.f32.mxu1 %vm1353_vm8, %v4995_v22 }
 0x210   : > { %1580 = vmatmul.mubr.f32.gmra.mrb[32].mxu1 %v5006_v52 }
 0x211   : > { %2634 = vmatprep.mubr.msk.f32.mxu1 %vm1353_vm8, %v5014_v10 }
 0x214   : > { %1586 = vmatmul.mubr.f32.gmra.mrb[34].mxu1 %v5026_v63 }
 0x215   : > { %2635 = vmatprep.mubr.msk.f32.mxu1 %vm1353_vm8, %v5034_v27 }
 0x218   : > { %1592 = vmatmul.mubr.f32.gmra.mrb[36].mxu1 %v1299_v37 }
 0x219   : > { %2636 = vmatprep.mubr.msk.f32.mxu1 %vm1353_vm8, %v1304_v16 }
 0x21c   : > { %1598 = vmatmul.mubr.f32.gmra.mrb[38].mxu1 %v1303_v24 }
 0x21d   : > { %2031 = vmatprep.mubr.f32.mxu1 %v5788_v38 }
 0x253   : > { %v2739_v56 = vpop.f32.mrb[48].mxu0 }
 0x254   : > { %v2740_v49 = vpop.f32.mrb[49].mxu0 }
 0x255   : > { %v2741_v9 = vadd.f32 %v2740_v49, %v2739_v56 }
 0x257   : > { %v2742_v62 = vpop.f32.mrb[50].mxu0  ;;  %v1671_v6 = vadd.f32 %v2741_v9, %v5163_v11 }
 0x258   : > { %v2743_v45 = vpop.f32.mrb[51].mxu0 }
 0x259   : > { %v2744_v26 = vadd.f32 %v2743_v45, %v2742_v62  ;;  %v5181_v45 = vpop.permute.xlu0 %1345 }
 0x25b   : > { %v2745_v21 = vpop.f32.mrb[52].mxu0  ;;  %v1676_v44 = vadd.f32 %v2744_v26, %v5166_v51 }
 0x25c   : > { %v2746_v22 = vpop.f32.mrb[53].mxu0 }
 0x25d   : > { %v2747_v52 = vadd.f32 %v2746_v22, %v2745_v21 }
 0x25f   : > { %v2748_v10 = vpop.f32.mrb[54].mxu0  ;;  %v1681_v39 = vadd.f32 %v2747_v52, %v5169_v33 }
 0x260   : > { %v2749_v63 = vpop.f32.mrb[55].mxu0 }
 0x261   : > { %v2750_v27 = vadd.f32 %v2749_v63, %v2748_v10 }
 0x263   : > { %v2751_v37 = vpop.f32.mrb[56].mxu0  ;;  %v1686_v48 = vadd.f32 %v2750_v27, %v5172_v7 }
 0x264   : > { %v2752_v16 = vpop.f32.mrb[57].mxu0 }
 0x265   : > { %v2753_v24 = vadd.f32 %v2752_v16, %v2751_v37  ;;  %v5184_v37 = vpop.permute.xlu1 %1350 }
 0x267   : > { %v2754_v5 = vpop.f32.mrb[58].mxu0  ;;  %v1691_v41 = vadd.f32 %v2753_v24, %v5175_v29 }
 0x268   : > { %v2755_v12 = vpop.f32.mrb[59].mxu0 }
 0x269   : > { %v2756_v40 = vadd.f32 %v2755_v12, %v2754_v5 }
 0x26b   : > { %v2757_v19 = vpop.f32.mrb[60].mxu0  ;;  %v1696_v23 = vadd.f32 %v2756_v40, %v5178_v28 }
 0x26c   : > { %v2758_v17 = vpop.f32.mrb[61].mxu0 }
 0x26d   : > { %v2759_v2 = vadd.f32 %v2758_v17, %v2757_v19 }
 0x26f   : > { %v2760_v15 = vpop.f32.mrb[62].mxu0  ;;  %v1701_v21 = vadd.f32 %v2759_v2, %v5181_v45 }
 0x270   : > { %v2761_v25 = vpop.f32.mrb[63].mxu0 }
 0x271   : > { %v2762_v1 = vadd.f32 %v2761_v25, %v2760_v15 }
 0x273   : > { %v1706_v24 = vadd.f32 %v2762_v1, %v5184_v37  ;;  %v5195_v1 = vld [vmem:[%s5384_s5 + $0x10] sm:$0xff] }
 0x28c   : > { %v1775_v34 = vpop.f32.mrb[64].mxu0 }
 0x28d   : > { %v1776_v43 = vadd.f32 %v1775_v34, %v1671_v6  ;;  %v1777_v13 = vpop.f32.mrb[65].mxu0  ;;  %v5190_v6 = vld [vmem:[%s5384_s5 + $0x8] sm:$0xff]  ;;  %v5205_v34 = vld [vmem:[%s5384_s5 + $0x18] sm:$0xff] }
 0x28e   : > { %v5219_v13 = vld [vmem:[%s5384_s5 + $0x28] sm:$0xff] }
 0x28f   : > { %v1840_v30 = vmul.f32 0.01, %v1776_v43  ;;  %vm1816_vm10 = vcmp.ge.f32.partialorder %v1776_v43, 0.0 }
 0x290   : > { %v1780_v32 = vpop.f32.mrb[66].mxu0 }
 0x291   : > { %v1781_v50 = vadd.f32 %v1780_v32, %v1676_v44  ;;  %v1782_v46 = vpop.f32.mrb[67].mxu0  ;;  %v1864_v54 = vsel %vm1816_vm10, %v1776_v43, %v1840_v30  ;;  %v5210_v43 = vld [vmem:[%s5384_s5 + $0x20] sm:$0xff]  ;;  %v5224_v44 = vld [vmem:[%s5384_s5 + $0x30] sm:$0xff]  ;;  %v5233_v32 = vld [vmem:[%s5384_s5 + $0x38] sm:$0xff] }
 0x293   : > { %vm1819_vm12 = vcmp.ge.f32.partialorder %v1781_v50, 0.0  ;;  %v1843_v35 = vmul.f32 0.01, %v1781_v50 }
 0x294   : > { %v1785_v18 = vpop.f32.mrb[68].mxu0 }
 0x295   : > { %v1786_v31 = vadd.f32 %v1785_v18, %v1681_v39  ;;  %v1787_v59 = vpop.f32.mrb[69].mxu0  ;;  %v1867_v3 = vsel %vm1819_vm12, %v1781_v50, %v1843_v35 }
 0x296   : > { %v3177_v47 = vpack.c.bf16 %v1867_v3, %v1864_v54 }
 0x297   : > { %v1846_v4 = vmul.f32 0.01, %v1786_v31  ;;  %vm1822_vm11 = vcmp.ge.f32.partialorder %v1786_v31, 0.0 }
 0x298   : > { %v1790_v8 = vpop.f32.mrb[70].mxu0  ;;  %3178 = vmatprep.subr.bf16.mxu0 %v3177_v47 }
 0x299   : > { %v1791_v57 = vadd.f32 %v1790_v8, %v1686_v48  ;;  %3180 = vmatpush3.bf16.msra.mxu0 %v3177_v47  ;;  %v1792_v53 = vpop.f32.mrb[71].mxu0  ;;  %v1870_v0 = vsel %vm1822_vm11, %v1786_v31, %v1846_v4 }
 0x29b   : > { %vm1825_vm13 = vcmp.ge.f32.partialorder %v1791_v57, 0.0  ;;  %v1849_v58 = vmul.f32 0.01, %v1791_v57 }
 0x29c   : > { %v1795_v14 = vpop.f32.mrb[72].mxu0 }
 0x29d   : > { %v1796_v36 = vadd.f32 %v1795_v14, %v1691_v41  ;;  %v1797_v42 = vpop.f32.mrb[73].mxu0  ;;  %v1873_v60 = vsel %vm1825_vm13, %v1791_v57, %v1849_v58 }
 0x29e   : > { %v3181_v20 = vpack.c.bf16 %v1873_v60, %v1870_v0 }
 0x29f   : > { %v1852_v49 = vmul.f32 0.01, %v1796_v36  ;;  %vm1828_vm14 = vcmp.ge.f32.partialorder %v1796_v36, 0.0 }
 0x2a0   : > { %v1800_v56 = vpop.f32.mrb[74].mxu0  ;;  %3182 = vmatprep.subr.bf16.mxu0 %v3181_v20 }
 0x2a1   : > { %v1801_v9 = vadd.f32 %v1800_v56, %v1696_v23  ;;  %3184 = vmatpush3.bf16.msra.mxu0 %v3181_v20  ;;  %v1802_v62 = vpop.f32.mrb[75].mxu0  ;;  %v1876_v63 = vsel %vm1828_vm14, %v1796_v36, %v1852_v49 }
 0x2a3   : > { %vm1831_vm15 = vcmp.ge.f32.partialorder %v1801_v9, 0.0  ;;  %v1855_v26 = vmul.f32 0.01, %v1801_v9 }
 0x2a4   : > { %v1805_v22 = vpop.f32.mrb[76].mxu0 }
 0x2a5   : > { %v1806_v52 = vadd.f32 %v1805_v22, %v1701_v21  ;;  %v1807_v10 = vpop.f32.mrb[77].mxu0  ;;  %v1879_v27 = vsel %vm1831_vm15, %v1801_v9, %v1855_v26 }
 0x2a6   : > { %v3185_v16 = vpack.c.bf16 %v1879_v27, %v1876_v63 }
 0x2a7   : > { %v1858_v12 = vmul.f32 0.01, %v1806_v52  ;;  %vm1834_vm0 = vcmp.ge.f32.partialorder %v1806_v52, 0.0 }
 0x2a8   : > { %v1810_v5 = vpop.f32.mrb[78].mxu0  ;;  %3186 = vmatprep.subr.bf16.mxu0 %v3185_v16 }
 0x2a9   : > { %v1811_v40 = vadd.f32 %v1810_v5, %v1706_v24  ;;  %3188 = vmatpush3.bf16.msra.mxu0 %v3185_v16  ;;  %v1812_v19 = vpop.f32.mrb[79].mxu0  ;;  %v1882_v2 = vsel %vm1834_vm0, %v1806_v52, %v1858_v12 }
 0x2ab   : > { %vm1837_vm1 = vcmp.ge.f32.partialorder %v1811_v40, 0.0  ;;  %v1861_v17 = vmul.f32 0.01, %v1811_v40 }
 0x2ad   : > { %v1885_v15 = vsel %vm1837_vm1, %v1811_v40, %v1861_v17 }
 0x2ae   : > { %v3189_v25 = vpack.c.bf16 %v1885_v15, %v1882_v2 }
 0x2b0   : > { %3190 = vmatprep.subr.bf16.mxu0 %v3189_v25 }
 0x2b1   : > { %3192 = vmatpush3.bf16.msra.mxu0 %v3189_v25 }
 0x2b2   : > { %3209 = vmatprep.subr.bf16.mxu0 %v5638_v61 }
 0x2b4   : > { %2873 = vmatmul.mubr.msk.f32.vlgmr.msra.gmra.mrb[80].mxu0 %vm1942_vm9, %v5190_v6 }
 0x2b5   : > { %2875 = vmatprep.mubr.msk.f32.mxu0 %vm1942_vm9, %v5195_v1 }
 0x2b8   : > { %2876 = vmatmul.mubr.msk.f32.gmra.mrb[82].mxu0 %vm1942_vm9, %v5205_v34 }
 0x2b9   : > { %2878 = vmatprep.mubr.msk.f32.mxu0 %vm1942_vm9, %v5210_v43 }
 0x2bc   : > { %2879 = vmatmul.mubr.msk.f32.gmra.mrb[84].mxu0 %vm1942_vm9, %v5219_v13 }
 0x2bd   : > { %2881 = vmatprep.mubr.msk.f32.mxu0 %vm1942_vm9, %v5224_v44 }
 0x2c0   : > { %2882 = vmatmul.mubr.msk.f32.gmra.mrb[86].mxu0 %vm1942_vm9, %v5233_v32 }
 0x2d3   : > { %v1557_v30 = vpop.f32.mrb[24].mxu1 }
 0x2d4   : > { %v3221_v50 = vadd.f32 %v1557_v30, %v5163_v11  ;;  %v1559_v46 = vpop.f32.mrb[25].mxu1 }
 0x2d5   : > { %v3222_v35 = vadd.f32 %v1559_v46, %v5163_v11 }
 0x2d6   : > { %v1838_v18 = vmul.f32 0.01, %v3221_v50  ;;  %vm1814_vm2 = vcmp.ge.f32.partialorder %v3221_v50, 0.0 }
 0x2d7   : > { %v1563_v39 = vpop.f32.mrb[26].mxu1  ;;  %v1839_v54 = vmul.f32 0.01, %v3222_v35  ;;  %vm1815_vm3 = vcmp.ge.f32.partialorder %v3222_v35, 0.0 }
 0x2d8   : > { %v3223_v31 = vadd.f32 %v1563_v39, %v5166_v51  ;;  %v1565_v59 = vpop.f32.mrb[27].mxu1  ;;  %v1862_v4 = vsel %vm1814_vm2, %v3221_v50, %v1838_v18 }
 0x2d9   : > { %v3224_v3 = vadd.f32 %v1565_v59, %v5166_v51  ;;  %v1863_v14 = vsel %vm1815_vm3, %v3222_v35, %v1839_v54  ;;  %vm3417_vm3 = vmmov 0  }
 0x2da   : > { %vm1817_vm5 = vcmp.ge.f32.partialorder %v3223_v31, 0.0  ;;  %v1841_v47 = vmul.f32 0.01, %v3223_v31  ;;  %2900 = vmatprep.mubr.msk.f32.mxu0 %vm3417_vm3, %v5788_v38 }
 0x2db   : > { %vm1818_vm6 = vcmp.ge.f32.partialorder %v3224_v3, 0.0  ;;  %v1842_v48 = vmul.f32 0.01, %v3224_v3  ;;  %v1569_v8 = vpop.f32.mrb[28].mxu1 }
 0x2dc   : > { %v1865_v57 = vsel %vm1817_vm5, %v3223_v31, %v1841_v47  ;;  %v3225_v53 = vadd.f32 %v1569_v8, %v5169_v33  ;;  %v1571_v11 = vpop.f32.mrb[29].mxu1 }
 0x2dd   : > { %v3163_v58 = vpack.c.bf16 %v1865_v57, %v1862_v4  ;;  %v3226_v41 = vadd.f32 %v1571_v11, %v5169_v33  ;;  %v1866_v36 = vsel %vm1818_vm6, %v3224_v3, %v1842_v48 }
 0x2de   : > { %v3161_v42 = vpack.c.bf16 %v1866_v36, %v1863_v14  ;;  %v1844_v60 = vmul.f32 0.01, %v3225_v53  ;;  %vm1820_vm4 = vcmp.ge.f32.partialorder %v3225_v53, 0.0 }
 0x2df   : > { %v1575_v0 = vpop.f32.mrb[30].mxu1  ;;  %v1845_v23 = vmul.f32 0.01, %v3226_v41  ;;  %vm1821_vm7 = vcmp.ge.f32.partialorder %v3226_v41, 0.0 }
 0x2e0   : > { %v3227_v51 = vadd.f32 %v1575_v0, %v5172_v7  ;;  %v1577_v20 = vpop.f32.mrb[31].mxu1  ;;  %3162 = vmatprep.subr.bf16.mxu1 %v3161_v42  ;;  %v1868_v62 = vsel %vm1820_vm4, %v3225_v53, %v1844_v60 }
 0x2e1   : > { %v3228_v56 = vadd.f32 %v1577_v20, %v5172_v7  ;;  %3164 = vmatpush1.bf16.msra.mxu1 %v3163_v58  ;;  %v1869_v63 = vsel %vm1821_vm7, %v3226_v41, %v1845_v23 }
 0x2e2   : > { %vm1823_vm8 = vcmp.ge.f32.partialorder %v3227_v51, 0.0  ;;  %v1847_v49 = vmul.f32 0.01, %v3227_v51 }
 0x2e3   : > { %vm1824_vm10 = vcmp.ge.f32.partialorder %v3228_v56, 0.0  ;;  %v1848_v9 = vmul.f32 0.01, %v3228_v56  ;;  %v1581_v33 = vpop.f32.mrb[32].mxu1 }
 0x2e4   : > { %v1871_v26 = vsel %vm1823_vm8, %v3227_v51, %v1847_v49  ;;  %v3229_v21 = vadd.f32 %v1581_v33, %v5175_v29  ;;  %v1583_v22 = vpop.f32.mrb[33].mxu1 }
 0x2e5   : > { %v3167_v52 = vpack.c.bf16 %v1871_v26, %v1868_v62  ;;  %v3230_v10 = vadd.f32 %v1583_v22, %v5175_v29  ;;  %v1872_v27 = vsel %vm1824_vm10, %v3228_v56, %v1848_v9 }
 0x2e6   : > { %v3165_v16 = vpack.c.bf16 %v1872_v27, %v1869_v63  ;;  %v1850_v7 = vmul.f32 0.01, %v3229_v21  ;;  %vm1826_vm12 = vcmp.ge.f32.partialorder %v3229_v21, 0.0 }
 0x2e7   : > { %v1587_v24 = vpop.f32.mrb[34].mxu1  ;;  %v1851_v40 = vmul.f32 0.01, %v3230_v10  ;;  %vm1827_vm11 = vcmp.ge.f32.partialorder %v3230_v10, 0.0 }
 0x2e8   : > { %v3231_v5 = vadd.f32 %v1587_v24, %v5178_v28  ;;  %v1589_v12 = vpop.f32.mrb[35].mxu1  ;;  %3166 = vmatprep.subr.bf16.mxu1 %v3165_v16  ;;  %v1874_v15 = vsel %vm1826_vm12, %v3229_v21, %v1850_v7 }
 0x2e9   : > { %v3232_v19 = vadd.f32 %v1589_v12, %v5178_v28  ;;  %3168 = vmatpush1.bf16.msra.mxu1 %v3167_v52  ;;  %v1875_v39 = vsel %vm1827_vm11, %v3230_v10, %v1851_v40 }
 0x2ea   : > { %vm1829_vm13 = vcmp.ge.f32.partialorder %v3231_v5, 0.0  ;;  %v1853_v17 = vmul.f32 0.01, %v3231_v5 }
 0x2eb   : > { %vm1830_vm14 = vcmp.ge.f32.partialorder %v3232_v19, 0.0  ;;  %v1854_v2 = vmul.f32 0.01, %v3232_v19  ;;  %v1593_v29 = vpop.f32.mrb[36].mxu1 }
 0x2ec   : > { %v1877_v25 = vsel %vm1829_vm13, %v3231_v5, %v1853_v17  ;;  %v3233_v30 = vadd.f32 %v1593_v29, %v5181_v45  ;;  %v1595_v50 = vpop.f32.mrb[37].mxu1 }
 0x2ed   : > { %v3171_v46 = vpack.c.bf16 %v1877_v25, %v1874_v15  ;;  %v3234_v35 = vadd.f32 %v1595_v50, %v5181_v45  ;;  %v1878_v18 = vsel %vm1830_vm14, %v3232_v19, %v1854_v2 }
 0x2ee   : > { %v3169_v31 = vpack.c.bf16 %v1878_v18, %v1875_v39  ;;  %v1856_v28 = vmul.f32 0.01, %v3233_v30  ;;  %vm1832_vm15 = vcmp.ge.f32.partialorder %v3233_v30, 0.0 }
 0x2ef   : > { %v1599_v59 = vpop.f32.mrb[38].mxu1  ;;  %v1857_v47 = vmul.f32 0.01, %v3234_v35  ;;  %vm1833_vm0 = vcmp.ge.f32.partialorder %v3234_v35, 0.0 }
 0x2f0   : > { %v3235_v54 = vadd.f32 %v1599_v59, %v5184_v37  ;;  %v1601_v3 = vpop.f32.mrb[39].mxu1  ;;  %3170 = vmatprep.subr.bf16.mxu1 %v3169_v31  ;;  %v1880_v45 = vsel %vm1832_vm15, %v3233_v30, %v1856_v28 }
 0x2f1   : > { %v3236_v48 = vadd.f32 %v1601_v3, %v5184_v37  ;;  %3172 = vmatpush1.bf16.msra.mxu1 %v3171_v46  ;;  %v1881_v11 = vsel %vm1833_vm0, %v3234_v35, %v1857_v47  ;;  %v5280_v37 = vpop.permute.xlu0 %1904  ;;  %v5308_v46 = vld [vmem:[%s5386_s7] sm:$0xff] }
 0x2f2   : > { %vm1835_vm1 = vcmp.ge.f32.partialorder %v3235_v54, 0.0  ;;  %v1859_v8 = vmul.f32 0.01, %v3235_v54 }
 0x2f3   : > { %vm1836_vm2 = vcmp.ge.f32.partialorder %v3236_v48, 0.0  ;;  %v1860_v4 = vmul.f32 0.01, %v3236_v48 }
 0x2f4   : > { %v1883_v57 = vsel %vm1835_vm1, %v3235_v54, %v1859_v8 }
 0x2f5   : > { %v3175_v53 = vpack.c.bf16 %v1883_v57, %v1880_v45  ;;  %v1884_v58 = vsel %vm1836_vm2, %v3236_v48, %v1860_v4 }
 0x2f6   : > { %v3173_v41 = vpack.c.bf16 %v1884_v58, %v1881_v11 }
 0x2f8   : > { %3174 = vmatprep.subr.bf16.mxu1 %v3173_v41 }
 0x2f9   : > { %3176 = vmatpush1.bf16.msra.mxu1 %v3175_v53 }
 0x2fc   : > { %2645 = vmatmul.mubr.msk.f32.vlgmr.msra.gmra.mrb[40].mxu1 %vm1942_vm9, %v5159_v55  ;;  %v5278_v55 = vpop.permute.xlu1 %1909 }
 0x2fd   : > { %2037 = vmatprep.mubr.f32.mxu1 %v5788_v38 }
 0x300   : > { %2646 = vmatmul.mubr.msk.f32.gmra.mrb[42].mxu1 %vm1942_vm9, %v5190_v6  ;;  %v5282_v6 = vpop.permute.xlu1 %1919 }
 0x301   : > { %2043 = vmatprep.mubr.f32.mxu1 %v5788_v38 }
 0x304   : > { %2647 = vmatmul.mubr.msk.f32.gmra.mrb[44].mxu1 %vm1942_vm9, %v5195_v1  ;;  %v5289_v60 = vpop.permute.xlu1 %1929 }
 0x305   : > { %2049 = vmatprep.mubr.f32.mxu1 %v5788_v38 }
 0x308   : > { %2648 = vmatmul.mubr.msk.f32.gmra.mrb[46].mxu1 %vm1942_vm9, %v5205_v34  ;;  %v5284_v34 = vpop.permute.xlu0 %1914  ;;  %v5297_v27 = vpop.permute.xlu1 %1939 }
 0x309   : > { %2055 = vmatprep.mubr.f32.mxu1 %v5788_v38 }
 0x30c   : > { %2649 = vmatmul.mubr.msk.f32.gmra.mrb[48].mxu1 %vm1942_vm9, %v5210_v43  ;;  %v5292_v23 = vpop.permute.xlu0 %1924 }
 0x30d   : > { %2061 = vmatprep.mubr.f32.mxu1 %v5788_v38 }
 0x310   : > { %2650 = vmatmul.mubr.msk.f32.gmra.mrb[50].mxu1 %vm1942_vm9, %v5219_v13  ;;  %v5299_v7 = vpop.permute.xlu0 %1934 }
 0x311   : > { %2067 = vmatprep.mubr.f32.mxu1 %v5788_v38 }
 0x314   : > { %2651 = vmatmul.mubr.msk.f32.gmra.mrb[52].mxu1 %vm1942_vm9, %v5224_v44 }
 0x315   : > { %2073 = vmatprep.mubr.f32.mxu1 %v5788_v38 }
 0x318   : > { %2652 = vmatmul.mubr.msk.f32.gmra.mrb[54].mxu1 %vm1942_vm9, %v5233_v32 }
 0x319   : > { %2325 = vmatprep.mubr.f32.mxu1 %v5788_v38 }
 0x387   : > { %v2874_v1 = vpop.f32.mrb[80].mxu0 }
 0x388   : > { %v2152_v43 = vadd.f32 %v2874_v1, %v5278_v55  ;;  %v2146_v13 = vpop.f32.mrb[81].mxu0 }
 0x389   : > { %v2147_v44 = vadd.f32 %v2146_v13, %v5280_v37 }
 0x38a   : > { %vm2190_vm5 = vcmp.ge.f32.partialorder %v2152_v43, 0.0  ;;  %v2214_v32 = vmul.f32 0.01, %v2152_v43 }
 0x38b   : > { %vm2187_vm6 = vcmp.ge.f32.partialorder %v2147_v44, 0.0  ;;  %v2211_v14 = vmul.f32 0.01, %v2147_v44  ;;  %v2877_v36 = vpop.f32.mrb[82].mxu0 }
 0x38c   : > { %v2238_v38 = vsel %vm2190_vm5, %v2152_v43, %v2214_v32  ;;  %v2162_v42 = vadd.f32 %v2877_v36, %v5282_v6  ;;  %v2156_v0 = vpop.f32.mrb[83].mxu0 }
 0x38d   : > { %v2235_v51 = vsel %vm2187_vm6, %v2147_v44, %v2211_v14  ;;  %v2157_v20 = vadd.f32 %v2156_v0, %v5284_v34 }
 0x38e   : > { %v3210_v56 = vpack.c.bf16 %v2238_v38, %v2235_v51  ;;  %vm2196_vm4 = vcmp.ge.f32.partialorder %v2162_v42, 0.0  ;;  %v2220_v49 = vmul.f32 0.01, %v2162_v42 }
 0x38f   : > { %vm2193_vm7 = vcmp.ge.f32.partialorder %v2157_v20, 0.0  ;;  %v2217_v9 = vmul.f32 0.01, %v2157_v20  ;;  %v2880_v33 = vpop.f32.mrb[84].mxu0 }
 0x390   : > { %v2244_v62 = vsel %vm2196_vm4, %v2162_v42, %v2220_v49  ;;  %v2172_v26 = vadd.f32 %v2880_v33, %v5289_v60  ;;  %v2166_v21 = vpop.f32.mrb[85].mxu0  ;;  %3211 = vmatpush3.bf16.msra.mxu0 %v3210_v56 }
 0x391   : > { %v2241_v22 = vsel %vm2193_vm7, %v2157_v20, %v2217_v9  ;;  %v2167_v52 = vadd.f32 %v2166_v21, %v5292_v23  ;;  %3212 = vmatprep.subr.bf16.mxu0 %v5638_v61 }
 0x392   : > { %v3213_v10 = vpack.c.bf16 %v2244_v62, %v2241_v22  ;;  %vm2202_vm8 = vcmp.ge.f32.partialorder %v2172_v26, 0.0  ;;  %v2226_v63 = vmul.f32 0.01, %v2172_v26 }
 0x393   : > { %vm2199_vm10 = vcmp.ge.f32.partialorder %v2167_v52, 0.0  ;;  %v2223_v16 = vmul.f32 0.01, %v2167_v52  ;;  %v2883_v24 = vpop.f32.mrb[86].mxu0 }
 0x394   : > { %v2250_v5 = vsel %vm2202_vm8, %v2172_v26, %v2226_v63  ;;  %v2182_v12 = vadd.f32 %v2883_v24, %v5297_v27  ;;  %v2176_v40 = vpop.f32.mrb[87].mxu0  ;;  %3214 = vmatpush3.bf16.msra.mxu0 %v3213_v10 }
 0x395   : > { %v2247_v19 = vsel %vm2199_vm10, %v2167_v52, %v2223_v16  ;;  %v2177_v17 = vadd.f32 %v2176_v40, %v5299_v7  ;;  %3215 = vmatprep.subr.bf16.mxu0 %v5638_v61 }
 0x396   : > { %v3216_v2 = vpack.c.bf16 %v2250_v5, %v2247_v19  ;;  %vm2208_vm12 = vcmp.ge.f32.partialorder %v2182_v12, 0.0  ;;  %v2232_v29 = vmul.f32 0.01, %v2182_v12 }
 0x397   : > { %vm2205_vm11 = vcmp.ge.f32.partialorder %v2177_v17, 0.0  ;;  %v2229_v15 = vmul.f32 0.01, %v2177_v17 }
 0x398   : > { %v2256_v25 = vsel %vm2208_vm12, %v2182_v12, %v2232_v29  ;;  %3217 = vmatpush3.bf16.msra.mxu0 %v3216_v2 }
 0x399   : > { %v2253_v30 = vsel %vm2205_vm11, %v2177_v17, %v2229_v15  ;;  %3218 = vmatprep.subr.bf16.mxu0 %v5638_v61 }
 0x39a   : > { %v3219_v50 = vpack.c.bf16 %v2256_v25, %v2253_v30 }
 0x39c   : > { %3220 = vmatpush3.bf16.msra.mxu0 %v3219_v50 }
 0x39f   : > { %2901 = vmatmul.mubr.msk.f32.vlgmr.msra.gmra.mrb[88].mxu0 %vm1942_vm9, %v5308_v46 }
 0x3cf   : > { %v2033_v35 = vpop.f32.mrb[40].mxu1 }
 0x3d0   : > { %v2034_v39 = vadd.f32 %v2033_v35, %v5280_v37  ;;  %v2035_v18 = vpop.f32.mrb[41].mxu1 }
 0x3d1   : > { %v2036_v31 = vadd.f32 %v2035_v18, %v5280_v37 }
 0x3d2   : > { %v2209_v28 = vmul.f32 0.01, %v2034_v39  ;;  %vm2185_vm13 = vcmp.ge.f32.partialorder %v2034_v39, 0.0 }
 0x3d3   : > { %v2039_v59 = vpop.f32.mrb[42].mxu1  ;;  %v2210_v3 = vmul.f32 0.01, %v2036_v31  ;;  %vm2186_vm14 = vcmp.ge.f32.partialorder %v2036_v31, 0.0 }
 0x3d4   : > { %v2040_v61 = vadd.f32 %v2039_v59, %v5278_v55  ;;  %v2041_v54 = vpop.f32.mrb[43].mxu1  ;;  %v2233_v45 = vsel %vm2185_vm13, %v2034_v39, %v2209_v28 }
 0x3d5   : > { %v2042_v47 = vadd.f32 %v2041_v54, %v5278_v55  ;;  %v2234_v37 = vsel %vm2186_vm14, %v2036_v31, %v2210_v3 }
 0x3d6   : > { %vm2188_vm15 = vcmp.ge.f32.partialorder %v2040_v61, 0.0  ;;  %v2212_v48 = vmul.f32 0.01, %v2040_v61 }
 0x3d7   : > { %vm2189_vm0 = vcmp.ge.f32.partialorder %v2042_v47, 0.0  ;;  %v2213_v8 = vmul.f32 0.01, %v2042_v47  ;;  %v2045_v4 = vpop.f32.mrb[44].mxu1 }
 0x3d8   : > { %v2236_v57 = vsel %vm2188_vm15, %v2040_v61, %v2212_v48  ;;  %v2046_v53 = vadd.f32 %v2045_v4, %v5284_v34  ;;  %v2047_v11 = vpop.f32.mrb[45].mxu1 }
 0x3d9   : > { %v3195_v58 = vpack.c.bf16 %v2236_v57, %v2233_v45  ;;  %v2048_v41 = vadd.f32 %v2047_v11, %v5284_v34  ;;  %v2237_v1 = vsel %vm2189_vm0, %v2042_v47, %v2213_v8  ;;  %v3418_v8 = vmov 1966171168   ;;  %v5789_v11 = vld [vmem:[#allocation9_spill] sm:$0xff] }
 0x3da   : > { %v3193_v43 = vpack.c.bf16 %v2237_v1, %v2234_v37  ;;  %v2215_v44 = vmul.f32 0.01, %v2046_v53  ;;  %vm2191_vm1 = vcmp.ge.f32.partialorder %v2046_v53, 0.0  ;;  %v2412_v4 = vunpack.c.l.s4 %v3418_v8 }
 0x3db   : > { %v2051_v13 = vpop.f32.mrb[46].mxu1  ;;  %v2216_v14 = vmul.f32 0.01, %v2048_v41  ;;  %vm2192_vm2 = vcmp.ge.f32.partialorder %v2048_v41, 0.0  ;;  %v2403_v57 = vstv %s2402_s26 }
 0x3dc   : > { %v2052_v55 = vadd.f32 %v2051_v13, %v5282_v6  ;;  %v2053_v32 = vpop.f32.mrb[47].mxu1  ;;  %3194 = vmatprep.subr.bf16.mxu1 %v3193_v43  ;;  %v2239_v0 = vsel %vm2191_vm1, %v2046_v53, %v2215_v44  ;;  %v2413_v45 = vunpack.c.0.s8 %v2412_v4 }
 0x3dd   : > { %v2054_v36 = vadd.f32 %v2053_v32, %v5282_v6  ;;  %3196 = vmatpush1.bf16.msra.mxu1 %v3195_v58  ;;  %v2240_v33 = vsel %vm2192_vm2, %v2048_v41, %v2216_v14  ;;  %v5790_v32 = vlaneseq }
 0x3de   : > { %vm2194_vm3 = vcmp.ge.f32.partialorder %v2052_v55, 0.0  ;;  %v2218_v38 = vmul.f32 0.01, %v2052_v55  ;;  %v2416_v58 = vsub.s32 %v2413_v45, %v5789_v11 }
 0x3df   : > { %vm2195_vm5 = vcmp.ge.f32.partialorder %v2054_v36, 0.0  ;;  %v2219_v42 = vmul.f32 0.01, %v2054_v36  ;;  %v2057_v34 = vpop.f32.mrb[48].mxu1 }
 0x3e0   : > { %v2242_v51 = vsel %vm2194_vm3, %v2052_v55, %v2218_v38  ;;  %v2058_v20 = vadd.f32 %v2057_v34, %v5292_v23  ;;  %v2059_v56 = vpop.f32.mrb[49].mxu1 }
 0x3e1   : > { %v3199_v49 = vpack.c.bf16 %v2242_v51, %v2239_v0  ;;  %v2060_v9 = vadd.f32 %v2059_v56, %v5292_v23  ;;  %v2243_v62 = vsel %vm2195_vm5, %v2054_v36, %v2219_v42 }
 0x3e2   : > { %v3197_v26 = vpack.c.bf16 %v2243_v62, %v2240_v33  ;;  %v2221_v6 = vmul.f32 0.01, %v2058_v20  ;;  %vm2197_vm6 = vcmp.ge.f32.partialorder %v2058_v20, 0.0 }
 0x3e3   : > { %v2063_v21 = vpop.f32.mrb[50].mxu1  ;;  %v2222_v10 = vmul.f32 0.01, %v2060_v9  ;;  %vm2198_vm4 = vcmp.ge.f32.partialorder %v2060_v9, 0.0 }
 0x3e4   : > { %v2064_v22 = vadd.f32 %v2063_v21, %v5289_v60  ;;  %v2065_v52 = vpop.f32.mrb[51].mxu1  ;;  %3198 = vmatprep.subr.bf16.mxu1 %v3197_v26  ;;  %v2245_v5 = vsel %vm2197_vm6, %v2058_v20, %v2221_v6 }
 0x3e5   : > { %v2066_v63 = vadd.f32 %v2065_v52, %v5289_v60  ;;  %3200 = vmatpush1.bf16.msra.mxu1 %v3199_v49  ;;  %v2246_v29 = vsel %vm2198_vm4, %v2060_v9, %v2222_v10 }
 0x3e6   : > { %vm2200_vm7 = vcmp.ge.f32.partialorder %v2064_v22, 0.0  ;;  %v2224_v16 = vmul.f32 0.01, %v2064_v22 }
 0x3e7   : > { %vm2201_vm8 = vcmp.ge.f32.partialorder %v2066_v63, 0.0  ;;  %v2225_v24 = vmul.f32 0.01, %v2066_v63  ;;  %v2069_v23 = vpop.f32.mrb[52].mxu1 }
 0x3e8   : > { %v2248_v12 = vsel %vm2200_vm7, %v2064_v22, %v2224_v16  ;;  %v2070_v40 = vadd.f32 %v2069_v23, %v5299_v7  ;;  %v2071_v19 = vpop.f32.mrb[53].mxu1 }
 0x3e9   : > { %v3203_v17 = vpack.c.bf16 %v2248_v12, %v2245_v5  ;;  %v2072_v2 = vadd.f32 %v2071_v19, %v5299_v7  ;;  %v2249_v15 = vsel %vm2201_vm8, %v2066_v63, %v2225_v24 }
 0x3ea   : > { %v3201_v25 = vpack.c.bf16 %v2249_v15, %v2246_v29  ;;  %v2227_v60 = vmul.f32 0.01, %v2070_v40  ;;  %vm2203_vm10 = vcmp.ge.f32.partialorder %v2070_v40, 0.0 }
 0x3eb   : > { %v2075_v30 = vpop.f32.mrb[54].mxu1  ;;  %v2228_v39 = vmul.f32 0.01, %v2072_v2  ;;  %vm2204_vm12 = vcmp.ge.f32.partialorder %v2072_v2, 0.0 }
 0x3ec   : > { %v2076_v50 = vadd.f32 %v2075_v30, %v5297_v27  ;;  %v2077_v35 = vpop.f32.mrb[55].mxu1  ;;  %3202 = vmatprep.subr.bf16.mxu1 %v3201_v25  ;;  %v2251_v7 = vsel %vm2203_vm10, %v2070_v40, %v2227_v60 }
 0x3ed   : > { %v2078_v18 = vadd.f32 %v2077_v35, %v5297_v27  ;;  %3204 = vmatpush1.bf16.msra.mxu1 %v3203_v17  ;;  %v2252_v54 = vsel %vm2204_vm12, %v2072_v2, %v2228_v39 }
 0x3ee   : > { %vm2206_vm11 = vcmp.ge.f32.partialorder %v2076_v50, 0.0  ;;  %v2230_v31 = vmul.f32 0.01, %v2076_v50 }
 0x3ef   : > { %vm2207_vm13 = vcmp.ge.f32.partialorder %v2078_v18, 0.0  ;;  %v2231_v59 = vmul.f32 0.01, %v2078_v18 }
 0x3f0   : > { %v2254_v28 = vsel %vm2206_vm11, %v2076_v50, %v2230_v31 }
 0x3f1   : > { %v3207_v61 = vpack.c.bf16 %v2254_v28, %v2251_v7  ;;  %v2255_v3 = vsel %vm2207_vm13, %v2078_v18, %v2231_v59 }
 0x3f2   : > { %v3205_v47 = vpack.c.bf16 %v2255_v3, %v2252_v54 }
 0x3f4   : > { %3206 = vmatprep.subr.bf16.mxu1 %v3205_v47 }
 0x3f5   : > { %3208 = vmatpush1.bf16.msra.mxu1 %v3207_v61 }
 0x3f8   : > { %2661 = vmatmul.mubr.msk.f32.vlgmr.msra.gmra.mrb[56].mxu1 %vm1942_vm9, %v5308_v46  ;;  %vm2436_vm9 = vcmp.lt.s32.totalorder %v5790_v32, 384 }
 0x472   : > { %v2398_v48 = vpop.f32.mrb[88].mxu0 }
 0x473   : > { %v2902_v27 = vpop.f32.mrb[89].mxu0  ;;  %v2406_v41 = vadd.f32 %v2403_v57, %v2398_v48 }
 0x475   : > { %v2424_v46 = vrot.slane %v2406_v41, %v2416_v58 }
 0x4cb   : > { %v2327_v53 = vpop.f32.mrb[56].mxu1 }
 0x4cc   : > { %v2404_v37 = vadd.f32 %v2403_v57, %v2327_v53  ;;  %v2329_v1 = vpop.f32.mrb[57].mxu1 }
 0x4cd   : > { %v2405_v43 = vadd.f32 %v2403_v57, %v2329_v1 }
 0x4cf   : > { %v2410_v13 = vcombine.low %v2404_v37, %v2405_v43 }
 0x4d1   : > { %v2417_v44 = vrot.slane %v2410_v13, %v2416_v58 }
 0x4d3   : > { %v2425_v55 = vcombine.low %v2417_v44, %v2424_v46 }
 0x4d5   : > { %v2432_v14 = vrot.slane %v2425_v55, %v2416_v58 }
 0x4d7   : > { %2438 = vst.msk [vmem:[%s342_s24] sm:$0x7] %vm2436_vm9, %v2432_v14 }
 0x4d8   : > { %3355 = shalt.err (!%p3352_p7)
}
 0x4d9   : > { %s3356_s26 = scalar_lea.hbm %s5337_s10, 48  ;;  %s3360_s22 = scalar_lea.hbm %s5388_s9, 96 }
 0x4da   : > { %p3357_p8 = scmp.ne.s32.totalorder %s5337_s10, %s3356_s26  ;;  %p3361_p1 = scmp.lt.u32.totalorder %s5337_s10, %s5388_s9 }
 0x4db   : > { %p3362_p0 = scmp.lt.u32.totalorder %s3360_s22, %s3356_s26  ;;  %p3364_p6 = scmp.lt.u32.totalorder %s3356_s26, %s5337_s10 }
 0x4dc   : > { %p3358_p11 = pnand %p3357_p8, %p5791_p9 }
 0x4dd   : > { %p3363_p5 = por %p3362_p0, %p3361_p1 }
 0x4de   : > { %p3359_p13 = pneg %p3358_p11 }
 0x4df   : > { %p3365_p10 = por %p3364_p6, %p3363_p5 }
 0x4e1   : > { %p3366_p12 = pnand %p3365_p10, %p3359_p13 }
 0x4e3   : > { %3369 = shalt.err (!%p3366_p12)
}
 0x4e4   : > { %3258 = dma.vmem_to_hbm [thread:$0]  (%p5791_p9), %s5339_s25, 48, %s5337_s10, %s2440_s15  }
 0x4e5 PF: > { %p3270_p2 = scmp.ge.s32.totalorder %s3408_s14, 2  ;;  %s2466_s30 = sand.u32 1, %s3396_s11  }
 0x4e6   : > { %p5792_p3 = scmp.ne.s32.totalorder %s5503_s21, 0  ;;  %s2467_s17 = scalar_lea.sflag [#allocation5], %s2466_s30 }
 0x4e8   : > { %p3265_p4 = pnand %p3270_p2, %p5792_p3 }
 0x4ea   : > { %3391 = dma.done.wait (!%p3265_p4), %s2467_s17, 48  }
 0x4eb   : > { %3393 = vsyncadd (!%p3265_p4), %s2467_s17, 4294967248  ;;  %p21_p7 = scmp.ge.s32.totalorder %s3498_s16, 4   ;;  %s5793_s11 = smov %s3400_s12 }
 0x4ec   : > { %s5794_s12 = smov %s3404_s13  ;;  %s5795_s13 = smov %s3509_s19 }
 0x4ed   : > { %s5796_s14 = smov %s3498_s16  ;;  %23 = sbr.rel (!%p21_p7) target bundleno = 6 (0x6), region = 97 }
 0x4f4   :  { %2472 = vsyncpa [#allocation4], 1 }
 0x4f5   :  { %2474 = vsyncpa [#allocation4 + $0x1], 1 }
 0x4f6   :  { %2475 = vsyncpa [#allocation5], 1 }
 0x4f7   :  { %2477 = vsyncpa [#allocation5 + $0x1], 1 }

</bundles_post_ra>
